<compile_context>
chip_gen: v5e
topology: v5e:2x2
jax: 0.10.0
libtpu: 0.0.40
codegen_flags: <defaults>
</compile_context>

<pallas_src>
import functools

import jax
import jax.numpy as jnp
from jax import lax
from jax.experimental import pallas as pl
from jax.experimental.pallas import tpu as pltpu


# ---------------------------------------------------------------------------
# In-kernel layout helpers (Mosaic-safe "reshape" via static slices + concat).
# ---------------------------------------------------------------------------
def _frames_to_rows(m, T, V):
    # (R, T*V) -> (T*R, V): move the frame axis from lanes to sublanes.
    return jnp.concatenate([m[:, t * V:(t + 1) * V] for t in range(T)], axis=0)


def _rows_to_frames(m, T, R):
    # (T*R, V) -> (R, T*V): inverse of _frames_to_rows.
    return jnp.concatenate([m[t * R:(t + 1) * R, :] for t in range(T)], axis=1)


# ---------------------------------------------------------------------------
# Fused per-batch kernel.
# Refs (per batch element):
#   scal  : (3,) SMEM                 [alpha, conv_sa bias, conv_ta bias]
#   x     : (C, TV)                   lane-dense input slab (bf16 or f32)
#   A     : (V, S*V) f32              base adjacency, lane-packed per subset
#   P     : (C, R)                    packed 1x1 projections, R = 2*S*IC + 2*OC
#                                     rows = [conv_a | conv_b | down | res]
#   pbias : (R, 1) f32                matching biases (BN folded for down/res)
#   Wd    : (OC, S*C)                 conv_d stacked over subsets (BN folded)
#   bd    : (OC, 1) f32
#   saW   : (1, kerV*OC) f32          conv_sa flattened (k outer, c inner)
#   taW   : (1, KT*OC)  f32           conv_ta flattened
#   fc1W/fc1b, fc2W/fc2b              channel-attention MLP
#   Wt    : (OC, K*OC)                TCN taps flattened (BN folded)
#   bt    : (OC, 1) f32
#   o     : (OC, TV) f32
# ---------------------------------------------------------------------------
def _aagcn_block_kernel(scal_ref, x_ref, A_ref, P_ref, pbias_ref, Wd_ref, bd_ref,
                        saW_ref, taW_ref, fc1W_ref, fc1b_ref, fc2W_ref, fc2b_ref,
                        Wt_ref, bt_ref, o_ref):
    f32 = jnp.float32
    C, TV = x_ref.shape
    V = A_ref.shape[0]
    S = A_ref.shape[1] // V
    OC = Wd_ref.shape[0]
    R = P_ref.shape[1]
    IC = (R - 2 * OC) // (2 * S)
    T = TV // V
    K = Wt_ref.shape[1] // OC
    kerV = saW_ref.shape[1] // OC
    KT = taW_ref.shape[1] // OC
    mxu = x_ref.dtype

    alpha = scal_ref[0]
    sa_b = scal_ref[1]
    ta_b = scal_ref[2]

    X = x_ref[...]                                                    # (C, TV)

    # ---- ONE tall MXU push: all per-subset embeddings + down + residual ----
    proj = lax.dot_general(P_ref[...], X, (((0,), (0,)), ((), ())),
                           preferred_element_type=f32) + pbias_ref[...]  # (R, TV)
    down = proj[2 * S * IC:2 * S * IC + OC, :]                        # (OC, TV)
    res = proj[2 * S * IC + OC:2 * S * IC + 2 * OC, :]                # (OC, TV)

    # Shared frames->rows relayout of X (C-row data, done once per batch elem).
    X_r = _frames_to_rows(X.astype(f32), T, V).astype(mxu)            # (T*C, V)

    # ---- adaptive adjacency + graph matmul per subset (conv_d un-hoisted) ----
    inv_ict = 1.0 / float(IC * T)
    z_blocks = []
    for i in range(S):
        Ar = _frames_to_rows(proj[i * IC:(i + 1) * IC, :], T, V).astype(mxu)
        Br = _frames_to_rows(proj[(S + i) * IC:(S + i + 1) * IC, :], T, V).astype(mxu)
        adj = lax.dot_general(Ar, Br, (((0,), (0,)), ((), ())),
                              preferred_element_type=f32)             # (V, V)
        A1 = (A_ref[:, i * V:(i + 1) * V]
              + jnp.tanh(adj * inv_ict) * alpha).astype(mxu)          # (V, V)
        Zr = jnp.dot(X_r, A1, preferred_element_type=f32)             # (T*C, V)
        z_blocks.append(_rows_to_frames(Zr, T, C))                    # (C, TV)
    Z = jnp.concatenate(z_blocks, axis=0).astype(mxu)                 # (S*C, TV)

    # ---- conv_d (stacked, BN folded) + down + ReLU ----
    y = jnp.dot(Wd_ref[...], Z, preferred_element_type=f32) + bd_ref[...] + down
    y = jnp.maximum(y, 0.0)                                           # (OC, TV) f32

    # ---- STC attention (all in-register) ----
    # spatial: mean over frames -> 1D conv over joints -> sigmoid gate
    se_s = y[:, 0:V]
    for t in range(1, T):
        se_s = se_s + y[:, t * V:(t + 1) * V]
    se_s = se_s * (1.0 / T)                                           # (OC, V)
    pad_s = (kerV - 1) // 2
    zs = jnp.zeros((OC, pad_s), f32)
    se_sp = jnp.concatenate([zs, se_s, zs], axis=1)                   # (OC, V+kerV-1)
    Sp = jnp.concatenate([se_sp[:, k:k + V] for k in range(kerV)], axis=0)  # (kerV*OC, V)
    gate_s = jax.nn.sigmoid(
        jnp.dot(saW_ref[...], Sp, preferred_element_type=f32) + sa_b)  # (1, V)
    y = y * (1.0 + jnp.tile(gate_s, (1, T)))

    # temporal: mean over joints -> 1D conv over frames -> sigmoid gate
    se_t = jnp.concatenate(
        [jnp.sum(y[:, t * V:(t + 1) * V], axis=1, keepdims=True) for t in range(T)],
        axis=1) * (1.0 / V)                                           # (OC, T)
    pad_t = (KT - 1) // 2
    zt = jnp.zeros((OC, pad_t), f32)
    se_tp = jnp.concatenate([zt, se_t, zt], axis=1)                   # (OC, T+KT-1)
    Tp = jnp.concatenate([se_tp[:, k:k + T] for k in range(KT)], axis=0)  # (KT*OC, T)
    gate_t = jax.nn.sigmoid(
        jnp.dot(taW_ref[...], Tp, preferred_element_type=f32) + ta_b)  # (1, T)
    f_t = jnp.concatenate(
        [jnp.broadcast_to(gate_t[:, t:t + 1], (1, V)) for t in range(T)], axis=1)
    y = y * (1.0 + f_t)

    # channel: global mean -> 2-layer MLP -> sigmoid gate
    se_c = jnp.sum(y, axis=1, keepdims=True) * (1.0 / TV)             # (OC, 1)
    h = jnp.maximum(
        jnp.dot(fc1W_ref[...], se_c, preferred_element_type=f32) + fc1b_ref[...], 0.0)
    gate_c = jax.nn.sigmoid(
        jnp.dot(fc2W_ref[...], h, preferred_element_type=f32) + fc2b_ref[...])
    y = y * (1.0 + gate_c)

    # ---- unit_tcn: 9 taps stacked into ONE matmul + residual + ReLU ----
    pad_k = (K - 1) // 2
    zp = jnp.zeros((OC, pad_k * V), f32)
    Yp = jnp.concatenate([zp, y, zp], axis=1)                         # (OC, (T+K-1)*V)
    Gs = jnp.concatenate([Yp[:, k * V:k * V + TV] for k in range(K)],
                         axis=0).astype(mxu)                          # (K*OC, TV)
    out = jnp.dot(Wt_ref[...], Gs, preferred_element_type=f32) + bt_ref[...] + res
    o_ref[...] = jnp.maximum(out, 0.0)


# ---------------------------------------------------------------------------
# JAX glue: eval-mode BN folding + weight packing + the single pallas_call.
# ---------------------------------------------------------------------------
def _fold_bn(bn, eps=1e-5):
    gamma, beta, mean, var = bn
    s = gamma / jnp.sqrt(var + eps)
    return s, beta - mean * s


@functools.partial(jax.jit, static_argnames=("use_bf16",))
def aagcn_block_forward(x, p, use_bf16=True):
    N, C, T, V = x.shape
    S, IC, _ = p['Wa'].shape
    OC = p['Wd'].shape[1]
    K = p['tcn_W'].shape[-1]
    kerV = p['sa_W'].shape[-1]
    KT = p['ta_W'].shape[-1]
    TV = T * V
    mxu = jnp.bfloat16 if use_bf16 else jnp.float32

    s_y, t_y = _fold_bn(p['bn'])
    s_d, t_d = _fold_bn(p['down_bn'])
    s_t, t_t = _fold_bn(p['tcn_bn'])
    s_r, t_r = _fold_bn(p['res_bn'])

    # Packed 1x1 projection of X: [conv_a (S*IC) ; conv_b (S*IC) ; down ; res]
    P = jnp.concatenate([p['Wa'].reshape(S * IC, C),
                         p['Wb'].reshape(S * IC, C),
                         p['down_W'] * s_d[:, None],
                         p['res_W'] * s_r[:, None]], axis=0)          # (R, C)
    pbias = jnp.concatenate([p['ba'].reshape(S * IC),
                             p['bb'].reshape(S * IC),
                             s_d * p['down_b'] + t_d,
                             s_r * p['res_b'] + t_r], axis=0)[:, None]  # (R, 1)
    R = P.shape[0]

    # conv_d stacked over subsets along the contraction axis (BN folded).
    Wd_all = jnp.concatenate([p['Wd'][i] * s_y[:, None] for i in range(S)], axis=1)
    bd = (s_y * p['bd'].sum(axis=0) + t_y)[:, None]

    # TCN taps flattened (k outer, c_in inner), BN folded.
    Wt = jnp.transpose(p['tcn_W'] * s_t[:, None, None], (0, 2, 1)).reshape(OC, K * OC)
    bt = (s_t * p['tcn_b'] + t_t)[:, None]

    # Base adjacency lane-packed; attention weights flattened lane-dense.
    A2d = jnp.concatenate([p['A'][i] for i in range(S)], axis=1)      # (V, S*V)
    saW = jnp.transpose(p['sa_W'][0], (1, 0)).reshape(1, kerV * OC)
    taW = jnp.transpose(p['ta_W'][0], (1, 0)).reshape(1, KT * OC)
    fc1b = p['fc1_b'][:, None]
    fc2b = p['fc2_b'][:, None]
    scal = jnp.stack([jnp.asarray(p['alpha'], jnp.float32),
                      p['sa_b'][0], p['ta_b'][0]])                    # (3,) SMEM

    # MXU operands in bf16 (or f32 for the debug path); biases stay f32.
    x2 = x.reshape(N, C, TV).astype(mxu)       # free reshape of contiguous NCTV
    P_t = jnp.transpose(P).astype(mxu)         # (C, R): lane-dense weight slab
    Wd_all = Wd_all.astype(mxu)
    Wt = Wt.astype(mxu)

    const = lambda n: (0, 0)
    kern = pl.pallas_call(
        _aagcn_block_kernel,
        out_shape=jax.ShapeDtypeStruct((N, OC, TV), jnp.float32),
        grid=(N,),
        in_specs=[
            pl.BlockSpec(memory_space=pltpu.MemorySpace.SMEM),        # scal
            pl.BlockSpec((None, C, TV), lambda n: (n, 0, 0)),         # x slab
            pl.BlockSpec((V, S * V), const),                          # A
            pl.BlockSpec((C, R), const),                              # packed proj
            pl.BlockSpec((R, 1), const),                              # proj biases
            pl.BlockSpec((OC, S * C), const),                         # conv_d stacked
            pl.BlockSpec((OC, 1), const),                             # bd
            pl.BlockSpec((1, kerV * OC), const),                      # conv_sa
            pl.BlockSpec((1, KT * OC), const),                        # conv_ta
            pl.BlockSpec((OC // 2, OC), const),                       # fc1 W
            pl.BlockSpec((OC // 2, 1), const),                        # fc1 b
            pl.BlockSpec((OC, OC // 2), const),                       # fc2 W
            pl.BlockSpec((OC, 1), const),                             # fc2 b
            pl.BlockSpec((OC, K * OC), const),                        # TCN taps
            pl.BlockSpec((OC, 1), const),                             # bt
        ],
        out_specs=pl.BlockSpec((None, OC, TV), lambda n: (n, 0, 0)),
        compiler_params=pltpu.CompilerParams(dimension_semantics=("parallel",)),
    )
    out2 = kern(scal, x2, A2d, P_t, pbias, Wd_all, bd, saW, taW,
                p['fc1_W'], fc1b, p['fc2_W'], fc2b, Wt, bt)
    return out2.reshape(N, OC, T, V)            # free reshape


# ---------------------------------------------------------------------------
# Pure-JAX reference (mirrors the PyTorch forward, eval-mode BN) for checking.
# ---------------------------------------------------------------------------
def _bn_eval(x, bn, eps=1e-5):
    gamma, beta, mean, var = bn
    s = gamma / jnp.sqrt(var + eps)
    return x * s[None, :, None, None] + (beta - mean * s)[None, :, None, None]


def _conv1d(x, W, b, pad):
    out = lax.conv_general_dilated(x, W, window_strides=(1,),
                                   padding=((pad, pad),),
                                   dimension_numbers=('NCH', 'OIH', 'NCH'))
    return out + b[None, :, None]


def _attention(y, p):
    se = y.mean(axis=2)                                            # (N, OC, V)
    pad_sa = (p['sa_W'].shape[-1] - 1) // 2
    se1 = jax.nn.sigmoid(_conv1d(se, p['sa_W'], p['sa_b'], pad_sa))  # (N, 1, V)
    y = y * se1[:, :, None, :] + y
    se = y.mean(axis=3)                                            # (N, OC, T)
    se1 = jax.nn.sigmoid(_conv1d(se, p['ta_W'], p['ta_b'], 4))       # (N, 1, T)
    y = y * se1[:, :, :, None] + y
    se = y.mean(axis=(2, 3))                                       # (N, OC)
    se1 = jax.nn.relu(se @ p['fc1_W'].T + p['fc1_b'])
    se2 = jax.nn.sigmoid(se1 @ p['fc2_W'].T + p['fc2_b'])
    return y * se2[:, :, None, None] + y


def reference_forward(x, p):
    N, C, T, V = x.shape
    S = p['A'].shape[0]
    IC = p['Wa'].shape[1]
    conv1x1 = lambda z, W, b: jnp.einsum('oc,nctv->notv', W, z) + b[None, :, None, None]
    y = None
    for i in range(S):
        a = conv1x1(x, p['Wa'][i], p['ba'][i])
        b = conv1x1(x, p['Wb'][i], p['bb'][i])
        A1 = jnp.transpose(a, (0, 3, 1, 2)).reshape(N, V, IC * T)
        A2 = b.reshape(N, IC * T, V)
        A1 = jnp.tanh(jnp.matmul(A1, A2) / (IC * T))
        A1 = p['A'][i][None] + A1 * p['alpha']
        z = jnp.matmul(x.reshape(N, C * T, V), A1).reshape(N, C, T, V)
        z = conv1x1(z, p['Wd'][i], p['bd'][i])
        y = z if y is None else y + z
    down = _bn_eval(conv1x1(x, p['down_W'], p['down_b']), p['down_bn'])
    y = jax.nn.relu(_bn_eval(y, p['bn']) + down)
    y = _attention(y, p)
    tcn = lax.conv_general_dilated(y, p['tcn_W'][..., None], window_strides=(1, 1),
                                   padding=((4, 4), (0, 0)),
                                   dimension_numbers=('NCHW', 'OIHW', 'NCHW'))
    tcn = _bn_eval(tcn + p['tcn_b'][None, :, None, None], p['tcn_bn'])
    res = _bn_eval(conv1x1(x, p['res_W'], p['res_b']), p['res_bn'])
    return jax.nn.relu(tcn + res)


# ---------------------------------------------------------------------------
# Deterministic parameter init (synthetic; mirrors the module's shapes).
# ---------------------------------------------------------------------------
def init_params(key, C, OC, S, V, coff=4):
    IC = OC // coff
    keys = iter(jax.random.split(key, 48))
    nrm = lambda shape, scale=0.2: scale * jax.random.normal(next(keys), shape, jnp.float32)

    def bn_p():
        return (1.0 + 0.1 * jax.random.normal(next(keys), (OC,), jnp.float32),
                0.1 * jax.random.normal(next(keys), (OC,), jnp.float32),
                0.1 * jax.random.normal(next(keys), (OC,), jnp.float32),
                1.0 + 0.1 * jnp.abs(jax.random.normal(next(keys), (OC,), jnp.float32)))

    ker_joint = V if V % 2 else V - 1
    return dict(
        A=nrm((S, V, V)), alpha=jnp.float32(0.7),
        Wa=nrm((S, IC, C)), ba=nrm((S, IC)),
        Wb=nrm((S, IC, C)), bb=nrm((S, IC)),
        Wd=nrm((S, OC, C)), bd=nrm((S, OC)),
        bn=bn_p(),
        down_W=nrm((OC, C)), down_b=nrm((OC,)), down_bn=bn_p(),
        sa_W=nrm((1, OC, ker_joint)), sa_b=nrm((1,)),
        ta_W=nrm((1, OC, 9)), ta_b=nrm((1,)),
        fc1_W=nrm((OC // 2, OC)), fc1_b=nrm((OC // 2,)),
        fc2_W=nrm((OC, OC // 2)), fc2_b=nrm((OC,)),
        tcn_W=nrm((OC, OC, 9)), tcn_b=nrm((OC,)), tcn_bn=bn_p(),
        res_W=nrm((OC, C)), res_b=nrm((OC,)), res_bn=bn_p(),
    )


if __name__ == "__main__":
    N, C, T, V = 2, 4, 8, 16       # batch, in-channels, frames, joints (T*V = 128)
    OC, S = 8, 3                   # out-channels, adjacency subsets

    key = jax.random.PRNGKey(0)
    kx, kp = jax.random.split(key)
    x = jax.random.normal(kx, (N, C, T, V), jnp.float32)
    params = init_params(kp, C, OC, S, V)

    ref = jax.block_until_ready(reference_forward(x, params))

    # f32 MXU path: tight debugging check (catches layout / packing bugs).
    out32 = jax.block_until_ready(aagcn_block_forward(x, params, use_bf16=False))
    assert out32.shape == (N, OC, T, V), out32.shape
    err32 = float(jnp.max(jnp.abs(out32 - ref)))
    assert jnp.allclose(out32, ref, atol=1e-2, rtol=1e-2), f"f32 max abs err {err32}"

    # bf16 MXU path (default perf path): looser tolerance for the narrower operands.
    out16 = jax.block_until_ready(aagcn_block_forward(x, params, use_bf16=True))
    assert out16.shape == (N, OC, T, V), out16.shape
    err16 = float(jnp.max(jnp.abs(out16 - ref)))
    assert jnp.allclose(out16, ref, atol=5e-2, rtol=5e-2), f"bf16 max abs err {err16}"

    print("KERNEL_OK")
</pallas_src>

<mosaic_0001>
module attributes {stable_mosaic.version = 11 : i64} {
  func.func @_aagcn_block_kernel(%arg0: i32, %arg1: memref<3xf32, #tpu.memory_space<smem>>, %arg2: memref<1x4x128xf32, #tpu.memory_space<vmem>>, %arg3: memref<16x48xf32, #tpu.memory_space<vmem>>, %arg4: memref<4x28xf32, #tpu.memory_space<vmem>>, %arg5: memref<28x1xf32, #tpu.memory_space<vmem>>, %arg6: memref<8x12xf32, #tpu.memory_space<vmem>>, %arg7: memref<8x1xf32, #tpu.memory_space<vmem>>, %arg8: memref<1x120xf32, #tpu.memory_space<vmem>>, %arg9: memref<1x72xf32, #tpu.memory_space<vmem>>, %arg10: memref<4x8xf32, #tpu.memory_space<vmem>>, %arg11: memref<4x1xf32, #tpu.memory_space<vmem>>, %arg12: memref<8x4xf32, #tpu.memory_space<vmem>>, %arg13: memref<8x1xf32, #tpu.memory_space<vmem>>, %arg14: memref<8x72xf32, #tpu.memory_space<vmem>>, %arg15: memref<8x1xf32, #tpu.memory_space<vmem>>, %arg16: memref<1x8x128xf32, #tpu.memory_space<vmem>>) attributes {dimension_semantics = [#tpu.dimension_semantics<parallel>], iteration_bounds = array<i64: 2>, scalar_prefetch = 0 : i64, scratch_operands = 0 : i64, tpu.core_type = #tpu.core_type<tc>, window_params = [{transform_indices = @transform_0, window_bounds = array<i64: 3>}, {transform_indices = @transform_1, window_bounds = array<i64: 1, 4, 128>}, {pipeline_mode = #tpu.pipeline_mode<synchronous>, transform_indices = @transform_2, window_bounds = array<i64: 16, 48>}, {pipeline_mode = #tpu.pipeline_mode<synchronous>, transform_indices = @transform_3, window_bounds = array<i64: 4, 28>}, {pipeline_mode = #tpu.pipeline_mode<synchronous>, transform_indices = @transform_4, window_bounds = array<i64: 28, 1>}, {pipeline_mode = #tpu.pipeline_mode<synchronous>, transform_indices = @transform_5, window_bounds = array<i64: 8, 12>}, {pipeline_mode = #tpu.pipeline_mode<synchronous>, transform_indices = @transform_6, window_bounds = array<i64: 8, 1>}, {pipeline_mode = #tpu.pipeline_mode<synchronous>, transform_indices = @transform_7, window_bounds = array<i64: 1, 120>}, {pipeline_mode = #tpu.pipeline_mode<synchronous>, transform_indices = @transform_8, window_bounds = array<i64: 1, 72>}, {pipeline_mode = #tpu.pipeline_mode<synchronous>, transform_indices = @transform_9, window_bounds = array<i64: 4, 8>}, {pipeline_mode = #tpu.pipeline_mode<synchronous>, transform_indices = @transform_10, window_bounds = array<i64: 4, 1>}, {pipeline_mode = #tpu.pipeline_mode<synchronous>, transform_indices = @transform_11, window_bounds = array<i64: 8, 4>}, {pipeline_mode = #tpu.pipeline_mode<synchronous>, transform_indices = @transform_12, window_bounds = array<i64: 8, 1>}, {pipeline_mode = #tpu.pipeline_mode<synchronous>, transform_indices = @transform_13, window_bounds = array<i64: 8, 72>}, {pipeline_mode = #tpu.pipeline_mode<synchronous>, transform_indices = @transform_14, window_bounds = array<i64: 8, 1>}, {transform_indices = @transform_15, window_bounds = array<i64: 1, 8, 128>}]} {
    %c0 = arith.constant 0 : index
    %0 = memref.load %arg1[%c0] : memref<3xf32, #tpu.memory_space<smem>>
    %c1 = arith.constant 1 : index
    %1 = memref.load %arg1[%c1] : memref<3xf32, #tpu.memory_space<smem>>
    %c2 = arith.constant 2 : index
    %2 = memref.load %arg1[%c2] : memref<3xf32, #tpu.memory_space<smem>>
    %c0_0 = arith.constant 0 : index
    %c0_1 = arith.constant 0 : index
    %c0_2 = arith.constant 0 : index
    %3 = vector.load %arg2[%c0_0, %c0_1, %c0_2] : memref<1x4x128xf32, #tpu.memory_space<vmem>>, vector<1x4x128xf32>
    %4 = vector.shape_cast %3 : vector<1x4x128xf32> to vector<4x128xf32>
    %c0_3 = arith.constant 0 : index
    %c0_4 = arith.constant 0 : index
    %5 = vector.load %arg4[%c0_3, %c0_4] : memref<4x28xf32, #tpu.memory_space<vmem>>, vector<4x28xf32>
    %cst = arith.constant dense<0.000000e+00> : vector<28x128xf32>
    %6 = tpu.matmul %5, %4, %cst {dimension_numbers = #tpu.dot_dimension_numbers<[0], [0], [1], [1], [0, 1, 1, 1], [], []>} : vector<4x28xf32>, vector<4x128xf32>, vector<28x128xf32> -> vector<28x128xf32>
    %c0_5 = arith.constant 0 : index
    %c0_6 = arith.constant 0 : index
    %7 = vector.load %arg5[%c0_5, %c0_6] : memref<28x1xf32, #tpu.memory_space<vmem>>, vector<28x1xf32>
    %8 = vector.broadcast %7 : vector<28x1xf32> to vector<28x128xf32>
    %9 = arith.addf %6, %8 : vector<28x128xf32>
    %10 = vector.extract_strided_slice %9 {offsets = [12, 0], sizes = [8, 128], strides = [1, 1]} : vector<28x128xf32> to vector<8x128xf32>
    %11 = vector.extract_strided_slice %9 {offsets = [20, 0], sizes = [8, 128], strides = [1, 1]} : vector<28x128xf32> to vector<8x128xf32>
    %12 = vector.extract_strided_slice %4 {offsets = [0, 0], sizes = [4, 16], strides = [1, 1]} : vector<4x128xf32> to vector<4x16xf32>
    %13 = vector.extract_strided_slice %4 {offsets = [0, 16], sizes = [4, 16], strides = [1, 1]} : vector<4x128xf32> to vector<4x16xf32>
    %14 = vector.extract_strided_slice %4 {offsets = [0, 32], sizes = [4, 16], strides = [1, 1]} : vector<4x128xf32> to vector<4x16xf32>
    %15 = vector.extract_strided_slice %4 {offsets = [0, 48], sizes = [4, 16], strides = [1, 1]} : vector<4x128xf32> to vector<4x16xf32>
    %16 = vector.extract_strided_slice %4 {offsets = [0, 64], sizes = [4, 16], strides = [1, 1]} : vector<4x128xf32> to vector<4x16xf32>
    %17 = vector.extract_strided_slice %4 {offsets = [0, 80], sizes = [4, 16], strides = [1, 1]} : vector<4x128xf32> to vector<4x16xf32>
    %18 = vector.extract_strided_slice %4 {offsets = [0, 96], sizes = [4, 16], strides = [1, 1]} : vector<4x128xf32> to vector<4x16xf32>
    %19 = vector.extract_strided_slice %4 {offsets = [0, 112], sizes = [4, 16], strides = [1, 1]} : vector<4x128xf32> to vector<4x16xf32>
    %20 = tpu.concatenate %12, %13, %14, %15, %16, %17, %18, %19 in 0 : vector<4x16xf32>, vector<4x16xf32>, vector<4x16xf32>, vector<4x16xf32>, vector<4x16xf32>, vector<4x16xf32>, vector<4x16xf32>, vector<4x16xf32> -> vector<32x16xf32>
    %21 = vector.extract_strided_slice %9 {offsets = [0, 0], sizes = [2, 128], strides = [1, 1]} : vector<28x128xf32> to vector<2x128xf32>
    %22 = vector.extract_strided_slice %21 {offsets = [0, 0], sizes = [2, 16], strides = [1, 1]} : vector<2x128xf32> to vector<2x16xf32>
    %23 = vector.extract_strided_slice %21 {offsets = [0, 16], sizes = [2, 16], strides = [1, 1]} : vector<2x128xf32> to vector<2x16xf32>
    %24 = vector.extract_strided_slice %21 {offsets = [0, 32], sizes = [2, 16], strides = [1, 1]} : vector<2x128xf32> to vector<2x16xf32>
    %25 = vector.extract_strided_slice %21 {offsets = [0, 48], sizes = [2, 16], strides = [1, 1]} : vector<2x128xf32> to vector<2x16xf32>
    %26 = vector.extract_strided_slice %21 {offsets = [0, 64], sizes = [2, 16], strides = [1, 1]} : vector<2x128xf32> to vector<2x16xf32>
    %27 = vector.extract_strided_slice %21 {offsets = [0, 80], sizes = [2, 16], strides = [1, 1]} : vector<2x128xf32> to vector<2x16xf32>
    %28 = vector.extract_strided_slice %21 {offsets = [0, 96], sizes = [2, 16], strides = [1, 1]} : vector<2x128xf32> to vector<2x16xf32>
    %29 = vector.extract_strided_slice %21 {offsets = [0, 112], sizes = [2, 16], strides = [1, 1]} : vector<2x128xf32> to vector<2x16xf32>
    %30 = tpu.concatenate %22, %23, %24, %25, %26, %27, %28, %29 in 0 : vector<2x16xf32>, vector<2x16xf32>, vector<2x16xf32>, vector<2x16xf32>, vector<2x16xf32>, vector<2x16xf32>, vector<2x16xf32>, vector<2x16xf32> -> vector<16x16xf32>
    %31 = vector.extract_strided_slice %9 {offsets = [6, 0], sizes = [2, 128], strides = [1, 1]} : vector<28x128xf32> to vector<2x128xf32>
    %32 = vector.extract_strided_slice %31 {offsets = [0, 0], sizes = [2, 16], strides = [1, 1]} : vector<2x128xf32> to vector<2x16xf32>
    %33 = vector.extract_strided_slice %31 {offsets = [0, 16], sizes = [2, 16], strides = [1, 1]} : vector<2x128xf32> to vector<2x16xf32>
    %34 = vector.extract_strided_slice %31 {offsets = [0, 32], sizes = [2, 16], strides = [1, 1]} : vector<2x128xf32> to vector<2x16xf32>
    %35 = vector.extract_strided_slice %31 {offsets = [0, 48], sizes = [2, 16], strides = [1, 1]} : vector<2x128xf32> to vector<2x16xf32>
    %36 = vector.extract_strided_slice %31 {offsets = [0, 64], sizes = [2, 16], strides = [1, 1]} : vector<2x128xf32> to vector<2x16xf32>
    %37 = vector.extract_strided_slice %31 {offsets = [0, 80], sizes = [2, 16], strides = [1, 1]} : vector<2x128xf32> to vector<2x16xf32>
    %38 = vector.extract_strided_slice %31 {offsets = [0, 96], sizes = [2, 16], strides = [1, 1]} : vector<2x128xf32> to vector<2x16xf32>
    %39 = vector.extract_strided_slice %31 {offsets = [0, 112], sizes = [2, 16], strides = [1, 1]} : vector<2x128xf32> to vector<2x16xf32>
    %40 = tpu.concatenate %32, %33, %34, %35, %36, %37, %38, %39 in 0 : vector<2x16xf32>, vector<2x16xf32>, vector<2x16xf32>, vector<2x16xf32>, vector<2x16xf32>, vector<2x16xf32>, vector<2x16xf32>, vector<2x16xf32> -> vector<16x16xf32>
    %cst_7 = arith.constant dense<0.000000e+00> : vector<16x16xf32>
    %41 = tpu.matmul %30, %40, %cst_7 {dimension_numbers = #tpu.dot_dimension_numbers<[0], [0], [1], [1], [0, 1, 1, 1], [], []>} : vector<16x16xf32>, vector<16x16xf32>, vector<16x16xf32> -> vector<16x16xf32>
    %c0_8 = arith.constant 0 : index
    %c0_9 = arith.constant 0 : index
    %42 = vector.load %arg3[%c0_8, %c0_9] : memref<16x48xf32, #tpu.memory_space<vmem>>, vector<16x16xf32>
    %cst_10 = arith.constant 6.250000e-02 : f32
    %43 = vector.broadcast %cst_10 : f32 to vector<16x16xf32>
    %44 = arith.mulf %41, %43 : vector<16x16xf32>
    %45 = math.tanh %44 : vector<16x16xf32>
    %46 = vector.broadcast %0 : f32 to vector<16x16xf32>
    %47 = arith.mulf %45, %46 : vector<16x16xf32>
    %48 = arith.addf %42, %47 : vector<16x16xf32>
    %cst_11 = arith.constant dense<0.000000e+00> : vector<32x16xf32>
    %49 = tpu.matmul %20, %48, %cst_11 {dimension_numbers = #tpu.dot_dimension_numbers<[1], [0], [0], [1], [0, 0, 1, 1], [], []>} : vector<32x16xf32>, vector<16x16xf32>, vector<32x16xf32> -> vector<32x16xf32>
    %50 = vector.extract_strided_slice %49 {offsets = [0, 0], sizes = [4, 16], strides = [1, 1]} : vector<32x16xf32> to vector<4x16xf32>
    %51 = vector.extract_strided_slice %49 {offsets = [4, 0], sizes = [4, 16], strides = [1, 1]} : vector<32x16xf32> to vector<4x16xf32>
    %52 = vector.extract_strided_slice %49 {offsets = [8, 0], sizes = [4, 16], strides = [1, 1]} : vector<32x16xf32> to vector<4x16xf32>
    %53 = vector.extract_strided_slice %49 {offsets = [12, 0], sizes = [4, 16], strides = [1, 1]} : vector<32x16xf32> to vector<4x16xf32>
    %54 = vector.extract_strided_slice %49 {offsets = [16, 0], sizes = [4, 16], strides = [1, 1]} : vector<32x16xf32> to vector<4x16xf32>
    %55 = vector.extract_strided_slice %49 {offsets = [20, 0], sizes = [4, 16], strides = [1, 1]} : vector<32x16xf32> to vector<4x16xf32>
    %56 = vector.extract_strided_slice %49 {offsets = [24, 0], sizes = [4, 16], strides = [1, 1]} : vector<32x16xf32> to vector<4x16xf32>
    %57 = vector.extract_strided_slice %49 {offsets = [28, 0], sizes = [4, 16], strides = [1, 1]} : vector<32x16xf32> to vector<4x16xf32>
    %58 = tpu.concatenate %50, %51, %52, %53, %54, %55, %56, %57 in 1 : vector<4x16xf32>, vector<4x16xf32>, vector<4x16xf32>, vector<4x16xf32>, vector<4x16xf32>, vector<4x16xf32>, vector<4x16xf32>, vector<4x16xf32> -> vector<4x128xf32>
    %59 = vector.extract_strided_slice %9 {offsets = [2, 0], sizes = [2, 128], strides = [1, 1]} : vector<28x128xf32> to vector<2x128xf32>
    %60 = vector.extract_strided_slice %59 {offsets = [0, 0], sizes = [2, 16], strides = [1, 1]} : vector<2x128xf32> to vector<2x16xf32>
    %61 = vector.extract_strided_slice %59 {offsets = [0, 16], sizes = [2, 16], strides = [1, 1]} : vector<2x128xf32> to vector<2x16xf32>
    %62 = vector.extract_strided_slice %59 {offsets = [0, 32], sizes = [2, 16], strides = [1, 1]} : vector<2x128xf32> to vector<2x16xf32>
    %63 = vector.extract_strided_slice %59 {offsets = [0, 48], sizes = [2, 16], strides = [1, 1]} : vector<2x128xf32> to vector<2x16xf32>
    %64 = vector.extract_strided_slice %59 {offsets = [0, 64], sizes = [2, 16], strides = [1, 1]} : vector<2x128xf32> to vector<2x16xf32>
    %65 = vector.extract_strided_slice %59 {offsets = [0, 80], sizes = [2, 16], strides = [1, 1]} : vector<2x128xf32> to vector<2x16xf32>
    %66 = vector.extract_strided_slice %59 {offsets = [0, 96], sizes = [2, 16], strides = [1, 1]} : vector<2x128xf32> to vector<2x16xf32>
    %67 = vector.extract_strided_slice %59 {offsets = [0, 112], sizes = [2, 16], strides = [1, 1]} : vector<2x128xf32> to vector<2x16xf32>
    %68 = tpu.concatenate %60, %61, %62, %63, %64, %65, %66, %67 in 0 : vector<2x16xf32>, vector<2x16xf32>, vector<2x16xf32>, vector<2x16xf32>, vector<2x16xf32>, vector<2x16xf32>, vector<2x16xf32>, vector<2x16xf32> -> vector<16x16xf32>
    %69 = vector.extract_strided_slice %9 {offsets = [8, 0], sizes = [2, 128], strides = [1, 1]} : vector<28x128xf32> to vector<2x128xf32>
    %70 = vector.extract_strided_slice %69 {offsets = [0, 0], sizes = [2, 16], strides = [1, 1]} : vector<2x128xf32> to vector<2x16xf32>
    %71 = vector.extract_strided_slice %69 {offsets = [0, 16], sizes = [2, 16], strides = [1, 1]} : vector<2x128xf32> to vector<2x16xf32>
    %72 = vector.extract_strided_slice %69 {offsets = [0, 32], sizes = [2, 16], strides = [1, 1]} : vector<2x128xf32> to vector<2x16xf32>
    %73 = vector.extract_strided_slice %69 {offsets = [0, 48], sizes = [2, 16], strides = [1, 1]} : vector<2x128xf32> to vector<2x16xf32>
    %74 = vector.extract_strided_slice %69 {offsets = [0, 64], sizes = [2, 16], strides = [1, 1]} : vector<2x128xf32> to vector<2x16xf32>
    %75 = vector.extract_strided_slice %69 {offsets = [0, 80], sizes = [2, 16], strides = [1, 1]} : vector<2x128xf32> to vector<2x16xf32>
    %76 = vector.extract_strided_slice %69 {offsets = [0, 96], sizes = [2, 16], strides = [1, 1]} : vector<2x128xf32> to vector<2x16xf32>
    %77 = vector.extract_strided_slice %69 {offsets = [0, 112], sizes = [2, 16], strides = [1, 1]} : vector<2x128xf32> to vector<2x16xf32>
    %78 = tpu.concatenate %70, %71, %72, %73, %74, %75, %76, %77 in 0 : vector<2x16xf32>, vector<2x16xf32>, vector<2x16xf32>, vector<2x16xf32>, vector<2x16xf32>, vector<2x16xf32>, vector<2x16xf32>, vector<2x16xf32> -> vector<16x16xf32>
    %cst_12 = arith.constant dense<0.000000e+00> : vector<16x16xf32>
    %79 = tpu.matmul %68, %78, %cst_12 {dimension_numbers = #tpu.dot_dimension_numbers<[0], [0], [1], [1], [0, 1, 1, 1], [], []>} : vector<16x16xf32>, vector<16x16xf32>, vector<16x16xf32> -> vector<16x16xf32>
    %c0_13 = arith.constant 0 : index
    %c16 = arith.constant 16 : index
    %80 = vector.load %arg3[%c0_13, %c16] : memref<16x48xf32, #tpu.memory_space<vmem>>, vector<16x16xf32>
    %cst_14 = arith.constant 6.250000e-02 : f32
    %81 = vector.broadcast %cst_14 : f32 to vector<16x16xf32>
    %82 = arith.mulf %79, %81 : vector<16x16xf32>
    %83 = math.tanh %82 : vector<16x16xf32>
    %84 = vector.broadcast %0 : f32 to vector<16x16xf32>
    %85 = arith.mulf %83, %84 : vector<16x16xf32>
    %86 = arith.addf %80, %85 : vector<16x16xf32>
    %cst_15 = arith.constant dense<0.000000e+00> : vector<32x16xf32>
    %87 = tpu.matmul %20, %86, %cst_15 {dimension_numbers = #tpu.dot_dimension_numbers<[1], [0], [0], [1], [0, 0, 1, 1], [], []>} : vector<32x16xf32>, vector<16x16xf32>, vector<32x16xf32> -> vector<32x16xf32>
    %88 = vector.extract_strided_slice %87 {offsets = [0, 0], sizes = [4, 16], strides = [1, 1]} : vector<32x16xf32> to vector<4x16xf32>
    %89 = vector.extract_strided_slice %87 {offsets = [4, 0], sizes = [4, 16], strides = [1, 1]} : vector<32x16xf32> to vector<4x16xf32>
    %90 = vector.extract_strided_slice %87 {offsets = [8, 0], sizes = [4, 16], strides = [1, 1]} : vector<32x16xf32> to vector<4x16xf32>
    %91 = vector.extract_strided_slice %87 {offsets = [12, 0], sizes = [4, 16], strides = [1, 1]} : vector<32x16xf32> to vector<4x16xf32>
    %92 = vector.extract_strided_slice %87 {offsets = [16, 0], sizes = [4, 16], strides = [1, 1]} : vector<32x16xf32> to vector<4x16xf32>
    %93 = vector.extract_strided_slice %87 {offsets = [20, 0], sizes = [4, 16], strides = [1, 1]} : vector<32x16xf32> to vector<4x16xf32>
    %94 = vector.extract_strided_slice %87 {offsets = [24, 0], sizes = [4, 16], strides = [1, 1]} : vector<32x16xf32> to vector<4x16xf32>
    %95 = vector.extract_strided_slice %87 {offsets = [28, 0], sizes = [4, 16], strides = [1, 1]} : vector<32x16xf32> to vector<4x16xf32>
    %96 = tpu.concatenate %88, %89, %90, %91, %92, %93, %94, %95 in 1 : vector<4x16xf32>, vector<4x16xf32>, vector<4x16xf32>, vector<4x16xf32>, vector<4x16xf32>, vector<4x16xf32>, vector<4x16xf32>, vector<4x16xf32> -> vector<4x128xf32>
    %97 = vector.extract_strided_slice %9 {offsets = [4, 0], sizes = [2, 128], strides = [1, 1]} : vector<28x128xf32> to vector<2x128xf32>
    %98 = vector.extract_strided_slice %97 {offsets = [0, 0], sizes = [2, 16], strides = [1, 1]} : vector<2x128xf32> to vector<2x16xf32>
    %99 = vector.extract_strided_slice %97 {offsets = [0, 16], sizes = [2, 16], strides = [1, 1]} : vector<2x128xf32> to vector<2x16xf32>
    %100 = vector.extract_strided_slice %97 {offsets = [0, 32], sizes = [2, 16], strides = [1, 1]} : vector<2x128xf32> to vector<2x16xf32>
    %101 = vector.extract_strided_slice %97 {offsets = [0, 48], sizes = [2, 16], strides = [1, 1]} : vector<2x128xf32> to vector<2x16xf32>
    %102 = vector.extract_strided_slice %97 {offsets = [0, 64], sizes = [2, 16], strides = [1, 1]} : vector<2x128xf32> to vector<2x16xf32>
    %103 = vector.extract_strided_slice %97 {offsets = [0, 80], sizes = [2, 16], strides = [1, 1]} : vector<2x128xf32> to vector<2x16xf32>
    %104 = vector.extract_strided_slice %97 {offsets = [0, 96], sizes = [2, 16], strides = [1, 1]} : vector<2x128xf32> to vector<2x16xf32>
    %105 = vector.extract_strided_slice %97 {offsets = [0, 112], sizes = [2, 16], strides = [1, 1]} : vector<2x128xf32> to vector<2x16xf32>
    %106 = tpu.concatenate %98, %99, %100, %101, %102, %103, %104, %105 in 0 : vector<2x16xf32>, vector<2x16xf32>, vector<2x16xf32>, vector<2x16xf32>, vector<2x16xf32>, vector<2x16xf32>, vector<2x16xf32>, vector<2x16xf32> -> vector<16x16xf32>
    %107 = vector.extract_strided_slice %9 {offsets = [10, 0], sizes = [2, 128], strides = [1, 1]} : vector<28x128xf32> to vector<2x128xf32>
    %108 = vector.extract_strided_slice %107 {offsets = [0, 0], sizes = [2, 16], strides = [1, 1]} : vector<2x128xf32> to vector<2x16xf32>
    %109 = vector.extract_strided_slice %107 {offsets = [0, 16], sizes = [2, 16], strides = [1, 1]} : vector<2x128xf32> to vector<2x16xf32>
    %110 = vector.extract_strided_slice %107 {offsets = [0, 32], sizes = [2, 16], strides = [1, 1]} : vector<2x128xf32> to vector<2x16xf32>
    %111 = vector.extract_strided_slice %107 {offsets = [0, 48], sizes = [2, 16], strides = [1, 1]} : vector<2x128xf32> to vector<2x16xf32>
    %112 = vector.extract_strided_slice %107 {offsets = [0, 64], sizes = [2, 16], strides = [1, 1]} : vector<2x128xf32> to vector<2x16xf32>
    %113 = vector.extract_strided_slice %107 {offsets = [0, 80], sizes = [2, 16], strides = [1, 1]} : vector<2x128xf32> to vector<2x16xf32>
    %114 = vector.extract_strided_slice %107 {offsets = [0, 96], sizes = [2, 16], strides = [1, 1]} : vector<2x128xf32> to vector<2x16xf32>
    %115 = vector.extract_strided_slice %107 {offsets = [0, 112], sizes = [2, 16], strides = [1, 1]} : vector<2x128xf32> to vector<2x16xf32>
    %116 = tpu.concatenate %108, %109, %110, %111, %112, %113, %114, %115 in 0 : vector<2x16xf32>, vector<2x16xf32>, vector<2x16xf32>, vector<2x16xf32>, vector<2x16xf32>, vector<2x16xf32>, vector<2x16xf32>, vector<2x16xf32> -> vector<16x16xf32>
    %cst_16 = arith.constant dense<0.000000e+00> : vector<16x16xf32>
    %117 = tpu.matmul %106, %116, %cst_16 {dimension_numbers = #tpu.dot_dimension_numbers<[0], [0], [1], [1], [0, 1, 1, 1], [], []>} : vector<16x16xf32>, vector<16x16xf32>, vector<16x16xf32> -> vector<16x16xf32>
    %c0_17 = arith.constant 0 : index
    %c32 = arith.constant 32 : index
    %118 = vector.load %arg3[%c0_17, %c32] : memref<16x48xf32, #tpu.memory_space<vmem>>, vector<16x16xf32>
    %cst_18 = arith.constant 6.250000e-02 : f32
    %119 = vector.broadcast %cst_18 : f32 to vector<16x16xf32>
    %120 = arith.mulf %117, %119 : vector<16x16xf32>
    %121 = math.tanh %120 : vector<16x16xf32>
    %122 = vector.broadcast %0 : f32 to vector<16x16xf32>
    %123 = arith.mulf %121, %122 : vector<16x16xf32>
    %124 = arith.addf %118, %123 : vector<16x16xf32>
    %cst_19 = arith.constant dense<0.000000e+00> : vector<32x16xf32>
    %125 = tpu.matmul %20, %124, %cst_19 {dimension_numbers = #tpu.dot_dimension_numbers<[1], [0], [0], [1], [0, 0, 1, 1], [], []>} : vector<32x16xf32>, vector<16x16xf32>, vector<32x16xf32> -> vector<32x16xf32>
    %126 = vector.extract_strided_slice %125 {offsets = [0, 0], sizes = [4, 16], strides = [1, 1]} : vector<32x16xf32> to vector<4x16xf32>
    %127 = vector.extract_strided_slice %125 {offsets = [4, 0], sizes = [4, 16], strides = [1, 1]} : vector<32x16xf32> to vector<4x16xf32>
    %128 = vector.extract_strided_slice %125 {offsets = [8, 0], sizes = [4, 16], strides = [1, 1]} : vector<32x16xf32> to vector<4x16xf32>
    %129 = vector.extract_strided_slice %125 {offsets = [12, 0], sizes = [4, 16], strides = [1, 1]} : vector<32x16xf32> to vector<4x16xf32>
    %130 = vector.extract_strided_slice %125 {offsets = [16, 0], sizes = [4, 16], strides = [1, 1]} : vector<32x16xf32> to vector<4x16xf32>
    %131 = vector.extract_strided_slice %125 {offsets = [20, 0], sizes = [4, 16], strides = [1, 1]} : vector<32x16xf32> to vector<4x16xf32>
    %132 = vector.extract_strided_slice %125 {offsets = [24, 0], sizes = [4, 16], strides = [1, 1]} : vector<32x16xf32> to vector<4x16xf32>
    %133 = vector.extract_strided_slice %125 {offsets = [28, 0], sizes = [4, 16], strides = [1, 1]} : vector<32x16xf32> to vector<4x16xf32>
    %134 = tpu.concatenate %126, %127, %128, %129, %130, %131, %132, %133 in 1 : vector<4x16xf32>, vector<4x16xf32>, vector<4x16xf32>, vector<4x16xf32>, vector<4x16xf32>, vector<4x16xf32>, vector<4x16xf32>, vector<4x16xf32> -> vector<4x128xf32>
    %135 = tpu.concatenate %58, %96, %134 in 0 : vector<4x128xf32>, vector<4x128xf32>, vector<4x128xf32> -> vector<12x128xf32>
    %c0_20 = arith.constant 0 : index
    %c0_21 = arith.constant 0 : index
    %136 = vector.load %arg6[%c0_20, %c0_21] : memref<8x12xf32, #tpu.memory_space<vmem>>, vector<8x12xf32>
    %cst_22 = arith.constant dense<0.000000e+00> : vector<8x128xf32>
    %137 = tpu.matmul %136, %135, %cst_22 {dimension_numbers = #tpu.dot_dimension_numbers<[1], [0], [0], [1], [0, 0, 1, 1], [], []>} : vector<8x12xf32>, vector<12x128xf32>, vector<8x128xf32> -> vector<8x128xf32>
    %c0_23 = arith.constant 0 : index
    %c0_24 = arith.constant 0 : index
    %138 = vector.load %arg7[%c0_23, %c0_24] : memref<8x1xf32, #tpu.memory_space<vmem>>, vector<8x1xf32>
    %139 = vector.broadcast %138 : vector<8x1xf32> to vector<8x128xf32>
    %140 = arith.addf %137, %139 : vector<8x128xf32>
    %141 = arith.addf %140, %10 : vector<8x128xf32>
    %cst_25 = arith.constant 0.000000e+00 : f32
    %142 = vector.broadcast %cst_25 : f32 to vector<8x128xf32>
    %143 = arith.maximumf %141, %142 : vector<8x128xf32>
    %144 = vector.extract_strided_slice %143 {offsets = [0, 0], sizes = [8, 16], strides = [1, 1]} : vector<8x128xf32> to vector<8x16xf32>
    %145 = vector.extract_strided_slice %143 {offsets = [0, 16], sizes = [8, 16], strides = [1, 1]} : vector<8x128xf32> to vector<8x16xf32>
    %146 = arith.addf %144, %145 : vector<8x16xf32>
    %147 = vector.extract_strided_slice %143 {offsets = [0, 32], sizes = [8, 16], strides = [1, 1]} : vector<8x128xf32> to vector<8x16xf32>
    %148 = arith.addf %146, %147 : vector<8x16xf32>
    %149 = vector.extract_strided_slice %143 {offsets = [0, 48], sizes = [8, 16], strides = [1, 1]} : vector<8x128xf32> to vector<8x16xf32>
    %150 = arith.addf %148, %149 : vector<8x16xf32>
    %151 = vector.extract_strided_slice %143 {offsets = [0, 64], sizes = [8, 16], strides = [1, 1]} : vector<8x128xf32> to vector<8x16xf32>
    %152 = arith.addf %150, %151 : vector<8x16xf32>
    %153 = vector.extract_strided_slice %143 {offsets = [0, 80], sizes = [8, 16], strides = [1, 1]} : vector<8x128xf32> to vector<8x16xf32>
    %154 = arith.addf %152, %153 : vector<8x16xf32>
    %155 = vector.extract_strided_slice %143 {offsets = [0, 96], sizes = [8, 16], strides = [1, 1]} : vector<8x128xf32> to vector<8x16xf32>
    %156 = arith.addf %154, %155 : vector<8x16xf32>
    %157 = vector.extract_strided_slice %143 {offsets = [0, 112], sizes = [8, 16], strides = [1, 1]} : vector<8x128xf32> to vector<8x16xf32>
    %158 = arith.addf %156, %157 : vector<8x16xf32>
    %cst_26 = arith.constant 1.250000e-01 : f32
    %159 = vector.broadcast %cst_26 : f32 to vector<8x16xf32>
    %160 = arith.mulf %158, %159 : vector<8x16xf32>
    %cst_27 = arith.constant 0.000000e+00 : f32
    %161 = vector.broadcast %cst_27 : f32 to vector<8x7xf32>
    %162 = tpu.concatenate %161, %160, %161 in 1 : vector<8x7xf32>, vector<8x16xf32>, vector<8x7xf32> -> vector<8x30xf32>
    %163 = vector.extract_strided_slice %162 {offsets = [0, 0], sizes = [8, 16], strides = [1, 1]} : vector<8x30xf32> to vector<8x16xf32>
    %164 = vector.extract_strided_slice %162 {offsets = [0, 1], sizes = [8, 16], strides = [1, 1]} : vector<8x30xf32> to vector<8x16xf32>
    %165 = vector.extract_strided_slice %162 {offsets = [0, 2], sizes = [8, 16], strides = [1, 1]} : vector<8x30xf32> to vector<8x16xf32>
    %166 = vector.extract_strided_slice %162 {offsets = [0, 3], sizes = [8, 16], strides = [1, 1]} : vector<8x30xf32> to vector<8x16xf32>
    %167 = vector.extract_strided_slice %162 {offsets = [0, 4], sizes = [8, 16], strides = [1, 1]} : vector<8x30xf32> to vector<8x16xf32>
    %168 = vector.extract_strided_slice %162 {offsets = [0, 5], sizes = [8, 16], strides = [1, 1]} : vector<8x30xf32> to vector<8x16xf32>
    %169 = vector.extract_strided_slice %162 {offsets = [0, 6], sizes = [8, 16], strides = [1, 1]} : vector<8x30xf32> to vector<8x16xf32>
    %170 = vector.extract_strided_slice %162 {offsets = [0, 7], sizes = [8, 16], strides = [1, 1]} : vector<8x30xf32> to vector<8x16xf32>
    %171 = vector.extract_strided_slice %162 {offsets = [0, 8], sizes = [8, 16], strides = [1, 1]} : vector<8x30xf32> to vector<8x16xf32>
    %172 = vector.extract_strided_slice %162 {offsets = [0, 9], sizes = [8, 16], strides = [1, 1]} : vector<8x30xf32> to vector<8x16xf32>
    %173 = vector.extract_strided_slice %162 {offsets = [0, 10], sizes = [8, 16], strides = [1, 1]} : vector<8x30xf32> to vector<8x16xf32>
    %174 = vector.extract_strided_slice %162 {offsets = [0, 11], sizes = [8, 16], strides = [1, 1]} : vector<8x30xf32> to vector<8x16xf32>
    %175 = vector.extract_strided_slice %162 {offsets = [0, 12], sizes = [8, 16], strides = [1, 1]} : vector<8x30xf32> to vector<8x16xf32>
    %176 = vector.extract_strided_slice %162 {offsets = [0, 13], sizes = [8, 16], strides = [1, 1]} : vector<8x30xf32> to vector<8x16xf32>
    %177 = vector.extract_strided_slice %162 {offsets = [0, 14], sizes = [8, 16], strides = [1, 1]} : vector<8x30xf32> to vector<8x16xf32>
    %178 = tpu.concatenate %163, %164, %165, %166, %167, %168, %169, %170, %171, %172, %173, %174, %175, %176, %177 in 0 : vector<8x16xf32>, vector<8x16xf32>, vector<8x16xf32>, vector<8x16xf32>, vector<8x16xf32>, vector<8x16xf32>, vector<8x16xf32>, vector<8x16xf32>, vector<8x16xf32>, vector<8x16xf32>, vector<8x16xf32>, vector<8x16xf32>, vector<8x16xf32>, vector<8x16xf32>, vector<8x16xf32> -> vector<120x16xf32>
    %c0_28 = arith.constant 0 : index
    %c0_29 = arith.constant 0 : index
    %179 = vector.load %arg8[%c0_28, %c0_29] : memref<1x120xf32, #tpu.memory_space<vmem>>, vector<1x120xf32>
    %cst_30 = arith.constant dense<0.000000e+00> : vector<1x16xf32>
    %180 = tpu.matmul %179, %178, %cst_30 {dimension_numbers = #tpu.dot_dimension_numbers<[1], [0], [0], [1], [0, 0, 1, 1], [], []>} : vector<1x120xf32>, vector<120x16xf32>, vector<1x16xf32> -> vector<1x16xf32>
    %181 = vector.broadcast %1 : f32 to vector<1x16xf32>
    %182 = arith.addf %180, %181 : vector<1x16xf32>
    %183 = arith.negf %182 : vector<1x16xf32>
    %184 = math.exp %183 : vector<1x16xf32>
    %cst_31 = arith.constant 1.000000e+00 : f32
    %185 = vector.broadcast %cst_31 : f32 to vector<1x16xf32>
    %186 = arith.addf %185, %184 : vector<1x16xf32>
    %187 = arith.divf %185, %186 : vector<1x16xf32>
    %188 = tpu.concatenate %187, %187, %187, %187, %187, %187, %187, %187 in 1 : vector<1x16xf32>, vector<1x16xf32>, vector<1x16xf32>, vector<1x16xf32>, vector<1x16xf32>, vector<1x16xf32>, vector<1x16xf32>, vector<1x16xf32> -> vector<1x128xf32>
    %cst_32 = arith.constant 1.000000e+00 : f32
    %189 = vector.broadcast %cst_32 : f32 to vector<1x128xf32>
    %190 = arith.addf %189, %188 : vector<1x128xf32>
    %191 = vector.broadcast %190 : vector<1x128xf32> to vector<8x128xf32>
    %192 = arith.mulf %143, %191 : vector<8x128xf32>
    %193 = vector.extract_strided_slice %192 {offsets = [0, 0], sizes = [8, 16], strides = [1, 1]} : vector<8x128xf32> to vector<8x16xf32>
    %cst_33 = arith.constant dense<0.000000e+00> : vector<8xf32>
    %194 = vector.multi_reduction <add>, %193, %cst_33 [1] : vector<8x16xf32> to vector<8xf32>
    %195 = vector.shape_cast %194 : vector<8xf32> to vector<8x1xf32>
    %196 = vector.extract_strided_slice %192 {offsets = [0, 16], sizes = [8, 16], strides = [1, 1]} : vector<8x128xf32> to vector<8x16xf32>
    %cst_34 = arith.constant dense<0.000000e+00> : vector<8xf32>
    %197 = vector.multi_reduction <add>, %196, %cst_34 [1] : vector<8x16xf32> to vector<8xf32>
    %198 = vector.shape_cast %197 : vector<8xf32> to vector<8x1xf32>
    %199 = vector.extract_strided_slice %192 {offsets = [0, 32], sizes = [8, 16], strides = [1, 1]} : vector<8x128xf32> to vector<8x16xf32>
    %cst_35 = arith.constant dense<0.000000e+00> : vector<8xf32>
    %200 = vector.multi_reduction <add>, %199, %cst_35 [1] : vector<8x16xf32> to vector<8xf32>
    %201 = vector.shape_cast %200 : vector<8xf32> to vector<8x1xf32>
    %202 = vector.extract_strided_slice %192 {offsets = [0, 48], sizes = [8, 16], strides = [1, 1]} : vector<8x128xf32> to vector<8x16xf32>
    %cst_36 = arith.constant dense<0.000000e+00> : vector<8xf32>
    %203 = vector.multi_reduction <add>, %202, %cst_36 [1] : vector<8x16xf32> to vector<8xf32>
    %204 = vector.shape_cast %203 : vector<8xf32> to vector<8x1xf32>
    %205 = vector.extract_strided_slice %192 {offsets = [0, 64], sizes = [8, 16], strides = [1, 1]} : vector<8x128xf32> to vector<8x16xf32>
    %cst_37 = arith.constant dense<0.000000e+00> : vector<8xf32>
    %206 = vector.multi_reduction <add>, %205, %cst_37 [1] : vector<8x16xf32> to vector<8xf32>
    %207 = vector.shape_cast %206 : vector<8xf32> to vector<8x1xf32>
    %208 = vector.extract_strided_slice %192 {offsets = [0, 80], sizes = [8, 16], strides = [1, 1]} : vector<8x128xf32> to vector<8x16xf32>
    %cst_38 = arith.constant dense<0.000000e+00> : vector<8xf32>
    %209 = vector.multi_reduction <add>, %208, %cst_38 [1] : vector<8x16xf32> to vector<8xf32>
    %210 = vector.shape_cast %209 : vector<8xf32> to vector<8x1xf32>
    %211 = vector.extract_strided_slice %192 {offsets = [0, 96], sizes = [8, 16], strides = [1, 1]} : vector<8x128xf32> to vector<8x16xf32>
    %cst_39 = arith.constant dense<0.000000e+00> : vector<8xf32>
    %212 = vector.multi_reduction <add>, %211, %cst_39 [1] : vector<8x16xf32> to vector<8xf32>
    %213 = vector.shape_cast %212 : vector<8xf32> to vector<8x1xf32>
    %214 = vector.extract_strided_slice %192 {offsets = [0, 112], sizes = [8, 16], strides = [1, 1]} : vector<8x128xf32> to vector<8x16xf32>
    %cst_40 = arith.constant dense<0.000000e+00> : vector<8xf32>
    %215 = vector.multi_reduction <add>, %214, %cst_40 [1] : vector<8x16xf32> to vector<8xf32>
    %216 = vector.shape_cast %215 : vector<8xf32> to vector<8x1xf32>
    %217 = tpu.concatenate %195, %198, %201, %204, %207, %210, %213, %216 in 1 : vector<8x1xf32>, vector<8x1xf32>, vector<8x1xf32>, vector<8x1xf32>, vector<8x1xf32>, vector<8x1xf32>, vector<8x1xf32>, vector<8x1xf32> -> vector<8x8xf32>
    %cst_41 = arith.constant 6.250000e-02 : f32
    %218 = vector.broadcast %cst_41 : f32 to vector<8x8xf32>
    %219 = arith.mulf %217, %218 : vector<8x8xf32>
    %cst_42 = arith.constant 0.000000e+00 : f32
    %220 = vector.broadcast %cst_42 : f32 to vector<8x4xf32>
    %221 = tpu.concatenate %220, %219, %220 in 1 : vector<8x4xf32>, vector<8x8xf32>, vector<8x4xf32> -> vector<8x16xf32>
    %222 = vector.extract_strided_slice %221 {offsets = [0, 0], sizes = [8, 8], strides = [1, 1]} : vector<8x16xf32> to vector<8x8xf32>
    %223 = vector.extract_strided_slice %221 {offsets = [0, 1], sizes = [8, 8], strides = [1, 1]} : vector<8x16xf32> to vector<8x8xf32>
    %224 = vector.extract_strided_slice %221 {offsets = [0, 2], sizes = [8, 8], strides = [1, 1]} : vector<8x16xf32> to vector<8x8xf32>
    %225 = vector.extract_strided_slice %221 {offsets = [0, 3], sizes = [8, 8], strides = [1, 1]} : vector<8x16xf32> to vector<8x8xf32>
    %226 = vector.extract_strided_slice %221 {offsets = [0, 4], sizes = [8, 8], strides = [1, 1]} : vector<8x16xf32> to vector<8x8xf32>
    %227 = vector.extract_strided_slice %221 {offsets = [0, 5], sizes = [8, 8], strides = [1, 1]} : vector<8x16xf32> to vector<8x8xf32>
    %228 = vector.extract_strided_slice %221 {offsets = [0, 6], sizes = [8, 8], strides = [1, 1]} : vector<8x16xf32> to vector<8x8xf32>
    %229 = vector.extract_strided_slice %221 {offsets = [0, 7], sizes = [8, 8], strides = [1, 1]} : vector<8x16xf32> to vector<8x8xf32>
    %230 = vector.extract_strided_slice %221 {offsets = [0, 8], sizes = [8, 8], strides = [1, 1]} : vector<8x16xf32> to vector<8x8xf32>
    %231 = tpu.concatenate %222, %223, %224, %225, %226, %227, %228, %229, %230 in 0 : vector<8x8xf32>, vector<8x8xf32>, vector<8x8xf32>, vector<8x8xf32>, vector<8x8xf32>, vector<8x8xf32>, vector<8x8xf32>, vector<8x8xf32>, vector<8x8xf32> -> vector<72x8xf32>
    %c0_43 = arith.constant 0 : index
    %c0_44 = arith.constant 0 : index
    %232 = vector.load %arg9[%c0_43, %c0_44] : memref<1x72xf32, #tpu.memory_space<vmem>>, vector<1x72xf32>
    %cst_45 = arith.constant dense<0.000000e+00> : vector<1x8xf32>
    %233 = tpu.matmul %232, %231, %cst_45 {dimension_numbers = #tpu.dot_dimension_numbers<[1], [0], [0], [1], [0, 0, 1, 1], [], []>} : vector<1x72xf32>, vector<72x8xf32>, vector<1x8xf32> -> vector<1x8xf32>
    %234 = vector.broadcast %2 : f32 to vector<1x8xf32>
    %235 = arith.addf %233, %234 : vector<1x8xf32>
    %236 = arith.negf %235 : vector<1x8xf32>
    %237 = math.exp %236 : vector<1x8xf32>
    %cst_46 = arith.constant 1.000000e+00 : f32
    %238 = vector.broadcast %cst_46 : f32 to vector<1x8xf32>
    %239 = arith.addf %238, %237 : vector<1x8xf32>
    %240 = arith.divf %238, %239 : vector<1x8xf32>
    %241 = vector.extract_strided_slice %240 {offsets = [0, 0], sizes = [1, 1], strides = [1, 1]} : vector<1x8xf32> to vector<1x1xf32>
    %242 = vector.shape_cast %241 : vector<1x1xf32> to vector<1x1xf32>
    %243 = vector.broadcast %242 : vector<1x1xf32> to vector<1x16xf32>
    %244 = vector.extract_strided_slice %240 {offsets = [0, 1], sizes = [1, 1], strides = [1, 1]} : vector<1x8xf32> to vector<1x1xf32>
    %245 = vector.shape_cast %244 : vector<1x1xf32> to vector<1x1xf32>
    %246 = vector.broadcast %245 : vector<1x1xf32> to vector<1x16xf32>
    %247 = vector.extract_strided_slice %240 {offsets = [0, 2], sizes = [1, 1], strides = [1, 1]} : vector<1x8xf32> to vector<1x1xf32>
    %248 = vector.shape_cast %247 : vector<1x1xf32> to vector<1x1xf32>
    %249 = vector.broadcast %248 : vector<1x1xf32> to vector<1x16xf32>
    %250 = vector.extract_strided_slice %240 {offsets = [0, 3], sizes = [1, 1], strides = [1, 1]} : vector<1x8xf32> to vector<1x1xf32>
    %251 = vector.shape_cast %250 : vector<1x1xf32> to vector<1x1xf32>
    %252 = vector.broadcast %251 : vector<1x1xf32> to vector<1x16xf32>
    %253 = vector.extract_strided_slice %240 {offsets = [0, 4], sizes = [1, 1], strides = [1, 1]} : vector<1x8xf32> to vector<1x1xf32>
    %254 = vector.shape_cast %253 : vector<1x1xf32> to vector<1x1xf32>
    %255 = vector.broadcast %254 : vector<1x1xf32> to vector<1x16xf32>
    %256 = vector.extract_strided_slice %240 {offsets = [0, 5], sizes = [1, 1], strides = [1, 1]} : vector<1x8xf32> to vector<1x1xf32>
    %257 = vector.shape_cast %256 : vector<1x1xf32> to vector<1x1xf32>
    %258 = vector.broadcast %257 : vector<1x1xf32> to vector<1x16xf32>
    %259 = vector.extract_strided_slice %240 {offsets = [0, 6], sizes = [1, 1], strides = [1, 1]} : vector<1x8xf32> to vector<1x1xf32>
    %260 = vector.shape_cast %259 : vector<1x1xf32> to vector<1x1xf32>
    %261 = vector.broadcast %260 : vector<1x1xf32> to vector<1x16xf32>
    %262 = vector.extract_strided_slice %240 {offsets = [0, 7], sizes = [1, 1], strides = [1, 1]} : vector<1x8xf32> to vector<1x1xf32>
    %263 = vector.shape_cast %262 : vector<1x1xf32> to vector<1x1xf32>
    %264 = vector.broadcast %263 : vector<1x1xf32> to vector<1x16xf32>
    %265 = tpu.concatenate %243, %246, %249, %252, %255, %258, %261, %264 in 1 : vector<1x16xf32>, vector<1x16xf32>, vector<1x16xf32>, vector<1x16xf32>, vector<1x16xf32>, vector<1x16xf32>, vector<1x16xf32>, vector<1x16xf32> -> vector<1x128xf32>
    %cst_47 = arith.constant 1.000000e+00 : f32
    %266 = vector.broadcast %cst_47 : f32 to vector<1x128xf32>
    %267 = arith.addf %266, %265 : vector<1x128xf32>
    %268 = vector.broadcast %267 : vector<1x128xf32> to vector<8x128xf32>
    %269 = arith.mulf %192, %268 : vector<8x128xf32>
    %cst_48 = arith.constant dense<0.000000e+00> : vector<8xf32>
    %270 = vector.multi_reduction <add>, %269, %cst_48 [1] : vector<8x128xf32> to vector<8xf32>
    %271 = vector.shape_cast %270 : vector<8xf32> to vector<8x1xf32>
    %cst_49 = arith.constant 7.812500e-03 : f32
    %272 = vector.broadcast %cst_49 : f32 to vector<8x1xf32>
    %273 = arith.mulf %271, %272 : vector<8x1xf32>
    %c0_50 = arith.constant 0 : index
    %c0_51 = arith.constant 0 : index
    %274 = vector.load %arg10[%c0_50, %c0_51] : memref<4x8xf32, #tpu.memory_space<vmem>>, vector<4x8xf32>
    %cst_52 = arith.constant dense<0.000000e+00> : vector<4x1xf32>
    %275 = tpu.matmul %274, %273, %cst_52 {dimension_numbers = #tpu.dot_dimension_numbers<[1], [0], [0], [1], [0, 0, 1, 1], [], []>} : vector<4x8xf32>, vector<8x1xf32>, vector<4x1xf32> -> vector<4x1xf32>
    %c0_53 = arith.constant 0 : index
    %c0_54 = arith.constant 0 : index
    %276 = vector.load %arg11[%c0_53, %c0_54] : memref<4x1xf32, #tpu.memory_space<vmem>>, vector<4x1xf32>
    %277 = arith.addf %275, %276 : vector<4x1xf32>
    %cst_55 = arith.constant 0.000000e+00 : f32
    %278 = vector.broadcast %cst_55 : f32 to vector<4x1xf32>
    %279 = arith.maximumf %277, %278 : vector<4x1xf32>
    %c0_56 = arith.constant 0 : index
    %c0_57 = arith.constant 0 : index
    %280 = vector.load %arg12[%c0_56, %c0_57] : memref<8x4xf32, #tpu.memory_space<vmem>>, vector<8x4xf32>
    %cst_58 = arith.constant dense<0.000000e+00> : vector<8x1xf32>
    %281 = tpu.matmul %280, %279, %cst_58 {dimension_numbers = #tpu.dot_dimension_numbers<[1], [0], [0], [1], [0, 0, 1, 1], [], []>} : vector<8x4xf32>, vector<4x1xf32>, vector<8x1xf32> -> vector<8x1xf32>
    %c0_59 = arith.constant 0 : index
    %c0_60 = arith.constant 0 : index
    %282 = vector.load %arg13[%c0_59, %c0_60] : memref<8x1xf32, #tpu.memory_space<vmem>>, vector<8x1xf32>
    %283 = arith.addf %281, %282 : vector<8x1xf32>
    %284 = arith.negf %283 : vector<8x1xf32>
    %285 = math.exp %284 : vector<8x1xf32>
    %cst_61 = arith.constant 1.000000e+00 : f32
    %286 = vector.broadcast %cst_61 : f32 to vector<8x1xf32>
    %287 = arith.addf %286, %285 : vector<8x1xf32>
    %288 = arith.divf %286, %287 : vector<8x1xf32>
    %cst_62 = arith.constant 1.000000e+00 : f32
    %289 = vector.broadcast %cst_62 : f32 to vector<8x1xf32>
    %290 = arith.addf %289, %288 : vector<8x1xf32>
    %291 = vector.broadcast %290 : vector<8x1xf32> to vector<8x128xf32>
    %292 = arith.mulf %269, %291 : vector<8x128xf32>
    %cst_63 = arith.constant 0.000000e+00 : f32
    %293 = vector.broadcast %cst_63 : f32 to vector<8x64xf32>
    %294 = tpu.concatenate %293, %292, %293 in 1 : vector<8x64xf32>, vector<8x128xf32>, vector<8x64xf32> -> vector<8x256xf32>
    %295 = vector.extract_strided_slice %294 {offsets = [0, 0], sizes = [8, 128], strides = [1, 1]} : vector<8x256xf32> to vector<8x128xf32>
    %296 = vector.extract_strided_slice %294 {offsets = [0, 16], sizes = [8, 128], strides = [1, 1]} : vector<8x256xf32> to vector<8x128xf32>
    %297 = vector.extract_strided_slice %294 {offsets = [0, 32], sizes = [8, 128], strides = [1, 1]} : vector<8x256xf32> to vector<8x128xf32>
    %298 = vector.extract_strided_slice %294 {offsets = [0, 48], sizes = [8, 128], strides = [1, 1]} : vector<8x256xf32> to vector<8x128xf32>
    %299 = vector.extract_strided_slice %294 {offsets = [0, 64], sizes = [8, 128], strides = [1, 1]} : vector<8x256xf32> to vector<8x128xf32>
    %300 = vector.extract_strided_slice %294 {offsets = [0, 80], sizes = [8, 128], strides = [1, 1]} : vector<8x256xf32> to vector<8x128xf32>
    %301 = vector.extract_strided_slice %294 {offsets = [0, 96], sizes = [8, 128], strides = [1, 1]} : vector<8x256xf32> to vector<8x128xf32>
    %302 = vector.extract_strided_slice %294 {offsets = [0, 112], sizes = [8, 128], strides = [1, 1]} : vector<8x256xf32> to vector<8x128xf32>
    %303 = vector.extract_strided_slice %294 {offsets = [0, 128], sizes = [8, 128], strides = [1, 1]} : vector<8x256xf32> to vector<8x128xf32>
    %304 = tpu.concatenate %295, %296, %297, %298, %299, %300, %301, %302, %303 in 0 : vector<8x128xf32>, vector<8x128xf32>, vector<8x128xf32>, vector<8x128xf32>, vector<8x128xf32>, vector<8x128xf32>, vector<8x128xf32>, vector<8x128xf32>, vector<8x128xf32> -> vector<72x128xf32>
    %c0_64 = arith.constant 0 : index
    %c0_65 = arith.constant 0 : index
    %305 = vector.load %arg14[%c0_64, %c0_65] : memref<8x72xf32, #tpu.memory_space<vmem>>, vector<8x72xf32>
    %cst_66 = arith.constant dense<0.000000e+00> : vector<8x128xf32>
    %306 = tpu.matmul %305, %304, %cst_66 {dimension_numbers = #tpu.dot_dimension_numbers<[1], [0], [0], [1], [0, 0, 1, 1], [], []>} : vector<8x72xf32>, vector<72x128xf32>, vector<8x128xf32> -> vector<8x128xf32>
    %c0_67 = arith.constant 0 : index
    %c0_68 = arith.constant 0 : index
    %307 = vector.load %arg15[%c0_67, %c0_68] : memref<8x1xf32, #tpu.memory_space<vmem>>, vector<8x1xf32>
    %308 = vector.broadcast %307 : vector<8x1xf32> to vector<8x128xf32>
    %309 = arith.addf %306, %308 : vector<8x128xf32>
    %310 = arith.addf %309, %11 : vector<8x128xf32>
    %cst_69 = arith.constant 0.000000e+00 : f32
    %311 = vector.broadcast %cst_69 : f32 to vector<8x128xf32>
    %312 = arith.maximumf %310, %311 : vector<8x128xf32>
    %c0_70 = arith.constant 0 : index
    %c0_71 = arith.constant 0 : index
    %c0_72 = arith.constant 0 : index
    %313 = vector.load %arg16[%c0_70, %c0_71, %c0_72] : memref<1x8x128xf32, #tpu.memory_space<vmem>>, vector<1x8x128xf32>
    %314 = vector.shape_cast %313 : vector<1x8x128xf32> to vector<8x128xf32>
    %315 = vector.shape_cast %312 : vector<8x128xf32> to vector<1x8x128xf32>
    tpu.vector_store %arg16[%c0_70, %c0_71, %c0_72], %315 {strides = array<i32>} : memref<1x8x128xf32, #tpu.memory_space<vmem>>, vector<1x8x128xf32>,
    return
  }
  func.func @transform_0(%arg0: i32) -> i32 {
    %c0_i32 = arith.constant 0 : i32
    %c0_i32_0 = arith.constant 0 : i32
    return %c0_i32 : i32
  }
  func.func @transform_1(%arg0: i32) -> (i32, i32, i32) {
    %c0_i32 = arith.constant 0 : i32
    %c0_i32_0 = arith.constant 0 : i32
    %c0_i32_1 = arith.constant 0 : i32
    return %arg0, %c0_i32, %c0_i32_0 : i32, i32, i32
  }
  func.func @transform_2(%arg0: i32) -> (i32, i32) {
    %c0_i32 = arith.constant 0 : i32
    %c0_i32_0 = arith.constant 0 : i32
    %c0_i32_1 = arith.constant 0 : i32
    return %c0_i32, %c0_i32_0 : i32, i32
  }
  func.func @transform_3(%arg0: i32) -> (i32, i32) {
    %c0_i32 = arith.constant 0 : i32
    %c0_i32_0 = arith.constant 0 : i32
    %c0_i32_1 = arith.constant 0 : i32
    return %c0_i32, %c0_i32_0 : i32, i32
  }
  func.func @transform_4(%arg0: i32) -> (i32, i32) {
    %c0_i32 = arith.constant 0 : i32
    %c0_i32_0 = arith.constant 0 : i32
    %c0_i32_1 = arith.constant 0 : i32
    return %c0_i32, %c0_i32_0 : i32, i32
  }
  func.func @transform_5(%arg0: i32) -> (i32, i32) {
    %c0_i32 = arith.constant 0 : i32
    %c0_i32_0 = arith.constant 0 : i32
    %c0_i32_1 = arith.constant 0 : i32
    return %c0_i32, %c0_i32_0 : i32, i32
  }
  func.func @transform_6(%arg0: i32) -> (i32, i32) {
    %c0_i32 = arith.constant 0 : i32
    %c0_i32_0 = arith.constant 0 : i32
    %c0_i32_1 = arith.constant 0 : i32
    return %c0_i32, %c0_i32_0 : i32, i32
  }
  func.func @transform_7(%arg0: i32) -> (i32, i32) {
    %c0_i32 = arith.constant 0 : i32
    %c0_i32_0 = arith.constant 0 : i32
    %c0_i32_1 = arith.constant 0 : i32
    return %c0_i32, %c0_i32_0 : i32, i32
  }
  func.func @transform_8(%arg0: i32) -> (i32, i32) {
    %c0_i32 = arith.constant 0 : i32
    %c0_i32_0 = arith.constant 0 : i32
    %c0_i32_1 = arith.constant 0 : i32
    return %c0_i32, %c0_i32_0 : i32, i32
  }
  func.func @transform_9(%arg0: i32) -> (i32, i32) {
    %c0_i32 = arith.constant 0 : i32
    %c0_i32_0 = arith.constant 0 : i32
    %c0_i32_1 = arith.constant 0 : i32
    return %c0_i32, %c0_i32_0 : i32, i32
  }
  func.func @transform_10(%arg0: i32) -> (i32, i32) {
    %c0_i32 = arith.constant 0 : i32
    %c0_i32_0 = arith.constant 0 : i32
    %c0_i32_1 = arith.constant 0 : i32
    return %c0_i32, %c0_i32_0 : i32, i32
  }
  func.func @transform_11(%arg0: i32) -> (i32, i32) {
    %c0_i32 = arith.constant 0 : i32
    %c0_i32_0 = arith.constant 0 : i32
    %c0_i32_1 = arith.constant 0 : i32
    return %c0_i32, %c0_i32_0 : i32, i32
  }
  func.func @transform_12(%arg0: i32) -> (i32, i32) {
    %c0_i32 = arith.constant 0 : i32
    %c0_i32_0 = arith.constant 0 : i32
    %c0_i32_1 = arith.constant 0 : i32
    return %c0_i32, %c0_i32_0 : i32, i32
  }
  func.func @transform_13(%arg0: i32) -> (i32, i32) {
    %c0_i32 = arith.constant 0 : i32
    %c0_i32_0 = arith.constant 0 : i32
    %c0_i32_1 = arith.constant 0 : i32
    return %c0_i32, %c0_i32_0 : i32, i32
  }
  func.func @transform_14(%arg0: i32) -> (i32, i32) {
    %c0_i32 = arith.constant 0 : i32
    %c0_i32_0 = arith.constant 0 : i32
    %c0_i32_1 = arith.constant 0 : i32
    return %c0_i32, %c0_i32_0 : i32, i32
  }
  func.func @transform_15(%arg0: i32) -> (i32, i32, i32) {
    %c0_i32 = arith.constant 0 : i32
    %c0_i32_0 = arith.constant 0 : i32
    %c0_i32_1 = arith.constant 0 : i32
    return %arg0, %c0_i32, %c0_i32_0 : i32, i32, i32
  }
}

</mosaic_0001>

<bundles_post_ra>
// kernel: aagcn_block_forward.1
= control target key start
LH: loop header
LB: loop body
LE: loop exit
PB: predicated region body
PF: predicated region fallthrough
CT: control target
= control target key end

     0   :  { %20 = vsyncpa [#allocation3], 0  ;;  %s2279_s18 = smov 0   ;;  %s2720_s0 = inlined_call_operand.vmem [shape: f32[3], index: 0, kind: input, shape index: {}]   ;;  %s2721_s1 = inlined_call_operand.vmem [shape: f32[2,4,128], index: 1, kind: input, shape index: {}]   ;;  %s2722_s2 = inlined_call_operand.vmem [shape: f32[16,48], index: 2, kind: input, shape index: {}]   ;;  %s2723_s3 = inlined_call_operand.vmem [shape: f32[4,28], index: 3, kind: input, shape index: {}]   ;;  %s2724_s4 = inlined_call_operand.vmem [shape: f32[28,1], index: 4, kind: input, shape index: {}]   ;;  %s2725_s5 = inlined_call_operand.vmem [shape: f32[8,12], index: 5, kind: input, shape index: {}]   ;;  %s2726_s6 = inlined_call_operand.vmem [shape: f32[8,1], index: 6, kind: input, shape index: {}]   ;;  %s2727_s7 = inlined_call_operand.vmem [shape: f32[1,120], index: 7, kind: input, shape index: {}]   ;;  %s2728_s8 = inlined_call_operand.vmem [shape: f32[1,72], index: 8, kind: input, shape index: {}]   ;;  %s2729_s9 = inlined_call_operand.vmem [shape: f32[4,8], index: 9, kind: input, shape index: {}]   ;;  %s2730_s10 = inlined_call_operand.vmem [shape: f32[4,1], index: 10, kind: input, shape index: {}]   ;;  %s2731_s11 = inlined_call_operand.vmem [shape: f32[8,4], index: 11, kind: input, shape index: {}]   ;;  %s2732_s12 = inlined_call_operand.vmem [shape: f32[8,1], index: 12, kind: input, shape index: {}]   ;;  %s2733_s13 = inlined_call_operand.vmem [shape: f32[8,72], index: 13, kind: input, shape index: {}]   ;;  %s2734_s14 = inlined_call_operand.vmem [shape: f32[8,1], index: 14, kind: input, shape index: {}]   ;;  %s2735_s15 = inlined_call_operand.vmem [shape: f32[2,8,128], index: 15, kind: output, shape index: {}]  }
   0x1 LB: > { %s1885_s19 = sadd.s32 4294967295, %s2165_s18   ;;  %p1887_p0 = scmp.ge.s32.totalorder %s2165_s18, 1  ;;  %s2165_s18 = sphi %s2279_s18, %s26_s18  }
   0x2   : > { %p377_p1 = scmp.lt.s32.totalorder %s2165_s18, 3  ;;  %s389_s22 = sshll.u32 %s2720_s0, 4  ;;  %s390_s22 = int_to_ptr.vmem [resolvable:$true] %s389_s22 }
   0x3   : > { %p1946_p3 = scmp.eq.s32.totalorder %s1885_s19, 0  ;;  %s2167_s23 = smov [#allocation2]  }
   0x4   : > { %p378_p2 = pnand %p1887_p0, %p377_p1 }
   0x6   : > { %p1942_p4 = pneg %p378_p2  ;;  %448 = sbr.rel (%p378_p2) target bundleno = 3840 (0xf00), region = 80 }
   0x8   : > { %p1943_p5 = pnand %p1946_p3, %p1942_p4 }
   0xa   : > { %1945 = dma.vmem_to_smem (!%p1943_p5), %s390_s22, 16, %s2167_s23, [#allocation3]  }
   0xb   : > { %2160 = dma.done.wait (%p1946_p3), [#allocation3], 16  }
   0xc   : > { %2162 = vsyncadd (%p1946_p3), [#allocation3], 4294967280 }
   0xd   : > { %455 = sfence }
   0xe   : > { %v508_v0 = vld [vmem:[%s2723_s3] sm:$0xf]  ;;  %p496_p6 = scmp.lt.s32.totalorder %s1885_s19, 1  ;;  %vm578_vm0 = vcmask 1043456   ;;  %v2168_v3 = vmov 0   ;;  %v510_v4 = vld [vmem:[%s2724_s4 + $0x8] sm:$0xff] }
   0xf   : > { %533 = vxpose.xlu0.b32.start.end [1/1] (short) (narrow) %v508_v0, 32  ;;  %v509_v2 = vld [vmem:[%s2724_s4] sm:$0xff]  ;;  %1990 = vset.pattern.permute.xlu1 %v2168_v3  ;;  %vm565_vm1 = vcmask 31744   ;;  %s2169_s21 = smov 48   ;;  %s2736_s22 = smov 112   ;;  %vm662_vm2 = vcmask 1041408  }
  0x10   : > { %s2754_s19 = smov (!%p496_p6, %s1885_s19), 1  ;;  %520 = vperm.xlu1 %1990, %v510_v4   ;;  %s2745_s23 = smov 96   ;;  %vm665_vm3 = vcmask 1045504   ;;  %vm730_vm4 = vcmask 130048   ;;  %vm842_vm5 = vcmask 261120   ;;  %vm844_vm6 = vcmask 392192  }
  0x11   : > { %s1892_s26 = sshll.u32 %s2754_s19, 2  ;;  %s2738_s24 = smov 64   ;;  %vm846_vm7 = vcmask 523264   ;;  %vm848_vm8 = vcmask 654336   ;;  %vm850_vm9 = vcmask 785408   ;;  %vm852_vm10 = vcmask 916480  }
  0x12   : > { %s499_s29 = scalar_lea.vmem %s2721_s1, %s1892_s26  ;;  %s2173_s25 = smov 32   ;;  %vm1280_vm11 = vcmask 97280   ;;  %vm1347_vm12 = vcmask 56320   ;;  %vm1349_vm13 = vcmask 187392   ;;  %vm1396_vm14 = vcmask 982016  }
  0x13   : > { %v2299_v1 = vld [vmem:[%s499_s29] sm:$0xf]  ;;  %s2740_s26 = smov 80   ;;  %s2744_s27 = smov 16  }
  0x14   : > { %1896 = vmatpush.msk.msra.mxu0 %vm578_vm0, %v2299_v1  ;;  %1937 = vmatpush.msk.msra.mxu3 %vm578_vm0, %v2299_v1  ;;  %s504_s28 = sld [smem:[#allocation2]]  ;;  %s2176_s20 = smov 7  }
  0x15   : > { %s2178_s29 = smov 115   ;;  %s2179_s30 = smov 114  }
  0x16   : > { %s2180_s16 = smov 119   ;;  %s2181_s17 = smov 118  }
  0x76   : > { %1989 = vset.pattern.permute.xlu0 %v2168_v3 }
  0x82   : > { %v521_v15 = vpop.permute.xlu1 %520 }
  0x95   : > { %515 = vperm.xlu0 %1989, %v509_v2  }
  0xb3   : > { %v549_v5 = vpop.trf.xlu0 }
  0xb4   : > { %1897 = vmatmul.msk.f32.vlgmr.msra.gmra.mxu0 %vm565_vm1, %v549_v5 }
  0xbb   : > { %v550_v6 = vpop.trf.xlu0 }
  0xbc   : > { %1898 = vmatmul.msk.f32.gmra.mxu0 %vm565_vm1, %v550_v6 }
  0xc3   : > { %v551_v7 = vpop.trf.xlu0 }
  0xc4   : > { %1899 = vmatmul.msk.f32.gmra.mxu0 %vm565_vm1, %v551_v7 }
  0xcb   : > { %v552_v8 = vpop.trf.xlu0 }
  0xcc   : > { %1900 = vmatmul.msk.f32.vlgmr.msra.gmra.mxu3 %vm565_vm1, %v552_v8 }
 0x107   : > { %v516_v9 = vpop.permute.xlu0 %515 }
 0x131   : > { %v599_v10 = vpop.f32.mrf.mxu0 }
 0x132   : > { %v2317_v11 = vadd.f32 %v599_v10, %v516_v9 }
 0x134   : > { %867 = vrot.lane.b32.xlu2 %v2317_v11, %s2169_s21  ;;  %855 = vrot.lane.b32.xlu1 %v2317_v11, %s2736_s22  ;;  %v2324_v12 = vrot.slane %v2317_v11, 4  ;;  %v2329_v13 = vrot.slane %v2317_v11, 6  ;;  %v2344_v14 = vrot.slane %v2317_v11, 2 }
 0x136   : > { %643 = vrot.lane.b32.xlu0 %v2324_v12, %s2745_s23 }
 0x139   : > { %v602_v16 = vpop.f32.mrf.mxu0 }
 0x13a   : > { %v2364_v17 = vadd.f32 %v602_v16, %v521_v15 }
 0x13c   : > { %1067 = vrot.lane.b32.xlu1 %v2317_v11, %s2745_s23  ;;  %858 = vrot.lane.b32.xlu2 %v2329_v13, %s2745_s23  ;;  %v2371_v18 = vrot.slane %v2364_v17, 2  ;;  %v883_v19 = vrot.slane %v2364_v17, 6  ;;  %v2382_v22 = vrot.slane %v2364_v17, 4 }
 0x13e   : > { %650 = vrot.lane.b32.xlu0 %v2317_v11, %s2738_s24  ;;  %v1991_v20 = vpack.i.bf16 %v2371_v18, %v2364_v17  ;;  %v1996_v21 = vpack.i.bf16 %v2364_v17, %v883_v19  ;;  %v2011_v23 = vpack.i.bf16 %v2382_v22, %v2371_v18  ;;  %v2001_v24 = vpack.i.bf16 %v883_v19, %v2382_v22 }
 0x144   : > { %1079 = vrot.lane.b32.xlu1 %v2317_v11, %s2173_s25  ;;  %861 = vrot.lane.b32.xlu2 %v2324_v12, %s2740_s26 }
 0x146   : > { %653 = vrot.lane.b32.xlu0 %v2329_v13, %s2169_s21 }
 0x14c   : > { %864 = vrot.lane.b32.xlu1 %v2344_v14, %s2738_s24  ;;  %873 = vrot.lane.b32.xlu2 %v2324_v12, %s2744_s27 }
 0x14e   : > { %656 = vrot.lane.b32.xlu0 %v2324_v12, %s2173_s25 }
 0x154   : > { %870 = vrot.lane.b32.xlu1 %v2329_v13, %s2173_s25  ;;  %1070 = vrot.lane.b32.xlu2 %v2329_v13, %s2740_s26 }
 0x156   : > { %659 = vrot.lane.b32.xlu0 %v2344_v14, %s2744_s27 }
 0x15c   : > { %1064 = vrot.lane.b32.xlu1 %v2344_v14, %s2736_s22  ;;  %1073 = vrot.lane.b32.xlu2 %v2324_v12, %s2738_s24 }
 0x15e   : > { %680 = vrot.lane.b32.xlu0 %v2329_v13, %s2738_s24 }
 0x164   : > { %1076 = vrot.lane.b32.xlu1 %v2344_v14, %s2169_s21  ;;  %1082 = vrot.lane.b32.xlu2 %v2329_v13, %s2744_s27 }
 0x166   : > { %683 = vrot.lane.b32.xlu0 %v2324_v12, %s2169_s21 }
 0x16c   : > { %1992 = vrot.lane.b32.xlu1 %v1991_v20, %s2738_s24  ;;  %1997 = vrot.lane.b32.xlu2 %v1996_v21, %s2169_s21 }
 0x16e   : > { %686 = vrot.lane.b32.xlu0 %v2344_v14, %s2173_s25 }
 0x174   : > { %2012 = vrot.lane.b32.xlu1 %v2011_v23, %s2744_s27  ;;  %2002 = vrot.lane.b32.xlu2 %v2001_v24, %s2173_s25 }
 0x176   : > { %671 = vrot.lane.b32.xlu0 %v2324_v12, %s2736_s22 }
 0x17c   : > { %2017 = vrot.lane.b32.xlu1 %v2001_v24, %s2745_s23  ;;  %2007 = vrot.lane.b32.xlu2 %v1996_v21, %s2736_s22 }
 0x17e   : > { %689 = vrot.lane.b32.xlu0 %v2317_v11, %s2744_s27 }
 0x184   : > { %2022 = vrot.lane.b32.xlu2 %v2011_v23, %s2740_s26 }
 0x186   : > { %674 = vrot.lane.b32.xlu0 %v2344_v14, %s2745_s23 }
 0x18e   : > { %v868_v25 = vpop.permute.xlu2 %867  ;;  %677 = vrot.lane.b32.xlu0 %v2317_v11, %s2740_s26 }
 0x196   : > { %v859_v26 = vpop.permute.xlu2 %858 }
 0x19e   : > { %v862_v27 = vpop.permute.xlu2 %861 }
 0x1a6   : > { %v856_v28 = vpop.permute.xlu1 %855  ;;  %v874_v29 = vpop.permute.xlu2 %873 }
 0x1a7   : > { %v876_v31 = vsel %vm662_vm2, %v2344_v14, %v856_v28 }
 0x1a8   : > { %v2402_v30 = vpop.permute.xlu0 %643  ;;  %v877_v32 = vsel %vm578_vm0, %v876_v31, %v859_v26 }
 0x1a9   : > { %v878_v35 = vsel %vm665_vm3, %v877_v32, %v862_v27 }
 0x1ae   : > { %v1068_v33 = vpop.permute.xlu1 %1067  ;;  %v1071_v36 = vpop.permute.xlu2 %1070 }
 0x1b0   : > { %v651_v34 = vpop.permute.xlu0 %650 }
 0x1b1   : > { %913 = vxpose.xlu1.b32.start [1/2] (short) (narrow) %v878_v35, 16 }
 0x1b6   : > { %v1080_v37 = vpop.permute.xlu1 %1079  ;;  %v1074_v40 = vpop.permute.xlu2 %1073 }
 0x1b8   : > { %v654_v38 = vpop.permute.xlu0 %653 }
 0x1b9   : > { %v667_v39 = vsel %vm662_vm2, %v651_v34, %v654_v38 }
 0x1be   : > { %v865_v41 = vpop.permute.xlu1 %864  ;;  %v1083_v44 = vpop.permute.xlu2 %1082 }
 0x1bf   : > { %v879_v45 = vsel %vm662_vm2, %v865_v41, %v868_v25 }
 0x1c0   : > { %v657_v42 = vpop.permute.xlu0 %656 }
 0x1c1   : > { %v668_v43 = vsel %vm578_vm0, %v667_v39, %v657_v42 }
 0x1c6   : > { %v871_v46 = vpop.permute.xlu1 %870  ;;  %v1998_v52 = vpop.permute.xlu2 %1997 }
 0x1c7   : > { %v880_v47 = vsel %vm578_vm0, %v879_v45, %v871_v46  ;;  %v1999_v4 = vunpack.i.l.bf16 %v1998_v52  ;;  %v2000_v20 = vunpack.i.h.bf16 %v1998_v52 }
 0x1c8   : > { %v660_v48 = vpop.permute.xlu0 %659  ;;  %v881_v49 = vsel %vm665_vm3, %v880_v47, %v874_v29 }
 0x1c9   : > { %v2414_v50 = vsel %vm665_vm3, %v668_v43, %v660_v48  ;;  %914 = vxpose.xlu1.b32.end [2/2] (short) (narrow) %v881_v49, 16 }
 0x1ce   : > { %v1065_v51 = vpop.permute.xlu1 %1064  ;;  %v2003_v61 = vpop.permute.xlu2 %2002 }
 0x1cf   : > { %v1085_v53 = vsel %vm662_vm2, %v2324_v12, %v1065_v51  ;;  %v2004_v7 = vunpack.i.l.bf16 %v2003_v61  ;;  %v2005_v31 = vunpack.i.h.bf16 %v2003_v61 }
 0x1d0   : > { %v681_v54 = vpop.permute.xlu0 %680  ;;  %v1086_v55 = vsel %vm578_vm0, %v1085_v53, %v1068_v33 }
 0x1d1   : > { %v1087_v56 = vsel %vm665_vm3, %v1086_v55, %v1071_v36 }
 0x1d2   : > { %1119 = vxpose.xlu2.b32.start [1/2] (short) (narrow) %v1087_v56, 16  ;;  %v2459_v56 = vpop.f32.mrf.mxu3 }
 0x1d6   : > { %v1077_v57 = vpop.permute.xlu1 %1076  ;;  %v2008_v5 = vpop.permute.xlu2 %2007 }
 0x1d7   : > { %v1088_v58 = vsel %vm662_vm2, %v1074_v40, %v1077_v57  ;;  %v2009_v19 = vunpack.i.l.bf16 %v2008_v5  ;;  %v2010_v21 = vunpack.i.h.bf16 %v2008_v5 }
 0x1d8   : > { %v684_v59 = vpop.permute.xlu0 %683  ;;  %v1089_v60 = vsel %vm578_vm0, %v1088_v58, %v1080_v37 }
 0x1d9   : > { %v1090_v62 = vsel %vm665_vm3, %v1089_v60, %v1083_v44  ;;  %v695_v24 = vsel %vm662_vm2, %v681_v54, %v684_v59  ;;  %v907_v35 = vsel %vm662_vm2, %v2364_v17, %v2009_v19  ;;  %v1113_v38 = vsel %vm662_vm2, %v2371_v18, %v2010_v21  ;;  %v760_v19 = vld [vmem:[%s2722_s2] sm:$0xff] }
 0x1da   : > { %1120 = vxpose.xlu2.b32.end [2/2] (short) (narrow) %v1090_v62, 16 }
 0x1de   : > { %v1993_v63 = vpop.permute.xlu1 %1992  ;;  %v2023_v23 = vpop.permute.xlu2 %2022 }
 0x1df   : > { %v1994_v2 = vunpack.i.l.bf16 %v1993_v63  ;;  %v1995_v16 = vunpack.i.h.bf16 %v1993_v63  ;;  %v2024_v32 = vunpack.i.l.bf16 %v2023_v23  ;;  %v2025_v42 = vunpack.i.h.bf16 %v2023_v23 }
 0x1e0   : > { %v687_v0 = vpop.permute.xlu0 %686 }
 0x1e1   : > { %v910_v6 = vsel %vm662_vm2, %v1994_v2, %v1999_v4  ;;  %v1116_v26 = vsel %vm662_vm2, %v1995_v16, %v2000_v20  ;;  %v696_v33 = vsel %vm578_vm0, %v695_v24, %v687_v0  ;;  %v761_v16 = vld [vmem:[%s2722_s2 + $0x8] sm:$0xff] }
 0x1e2   : > { %v911_v12 = vsel %vm578_vm0, %v910_v6, %v2004_v7  ;;  %v1117_v40 = vsel %vm578_vm0, %v1116_v26, %v2005_v31 }
 0x1e6   : > { %v2013_v8 = vpop.permute.xlu1 %2012 }
 0x1e7   : > { %v2014_v9 = vunpack.i.l.bf16 %v2013_v8  ;;  %v2015_v27 = vunpack.i.h.bf16 %v2013_v8 }
 0x1e8   : > { %v672_v10 = vpop.permute.xlu0 %671 }
 0x1e9   : > { %v912_v15 = vsel %vm665_vm3, %v911_v12, %v2014_v9  ;;  %v1118_v43 = vsel %vm665_vm3, %v1117_v40, %v2015_v27  ;;  %v692_v45 = vsel %vm662_vm2, %v2329_v13, %v672_v10  ;;  %v611_v10 = vrot.slane %v2299_v1, 4 }
 0x1ea   : > { %965 = vmatpush.msrb.mxu3 %v912_v15 }
 0x1ee   : > { %v2018_v25 = vpop.permute.xlu1 %2017 }
 0x1ef   : > { %v2020_v28 = vunpack.i.h.bf16 %v2018_v25  ;;  %v2019_v29 = vunpack.i.l.bf16 %v2018_v25 }
 0x1f0   : > { %v690_v34 = vpop.permute.xlu0 %689 }
 0x1f1   : > { %v697_v36 = vsel %vm665_vm3, %v696_v33, %v690_v34  ;;  %v908_v37 = vsel %vm578_vm0, %v907_v35, %v2019_v29  ;;  %v1114_v41 = vsel %vm578_vm0, %v1113_v38, %v2020_v28 }
 0x1f2   : > { %751 = vmatpush.msra.mxu1 %v697_v36  ;;  %v909_v39 = vsel %vm665_vm3, %v908_v37, %v2024_v32  ;;  %v1115_v17 = vsel %vm665_vm3, %v1114_v41, %v2025_v42 }
 0x1f3   : > { %966 = vmatpush.msrb.mxu3 %v909_v39 }
 0x1f5   : > { %1171 = vmatpush.msra.mxu3 %v1118_v43 }
 0x1f7   : > { %1172 = vmatpush.msra.mxu3 %v1115_v17 }
 0x1f8   : > { %v675_v44 = vpop.permute.xlu0 %674 }
 0x1f9   : > { %v693_v18 = vsel %vm578_vm0, %v692_v45, %v675_v44 }
 0x200   : > { %v678_v46 = vpop.permute.xlu0 %677 }
 0x201   : > { %v694_v47 = vsel %vm665_vm3, %v693_v18, %v678_v46 }
 0x202   : > { %752 = vmatpush.msra.mxu1 %v694_v47 }
 0x223   : > { %647 = vrot.lane.b32.xlu1 %v2344_v14, %s2740_s26 }
 0x23c   : > { %2071 = vset.pattern.permute.xlu2 %v2168_v3 }
 0x243   : > { %639 = vrot.lane.b32.xlu2 %v2329_v13, %s2736_s22 }
 0x265   : > { %v929_v48 = vpop.trf.xlu1 }
 0x266   : > { %1907 = vmatmul.msk.f32.vlgmr.msrb.gmra.mxu3 %vm730_vm4, %v929_v48 }
 0x26b   : > { %v1135_v51 = vpop.trf.xlu2 }
 0x26d   : > { %v930_v49 = vpop.trf.xlu1 }
 0x26e   : > { %1908 = vmatmul.msk.f32.gmra.mxu3 %vm730_vm4, %v930_v49 }
 0x273   : > { %v1136_v52 = vpop.trf.xlu2 }
 0x276   : > { %1913 = vmatmul.msk.f32.vlgmr.msra.gmra.mxu3 %vm730_vm4, %v1135_v51 }
 0x27e   : > { %1914 = vmatmul.msk.f32.gmra.mxu3 %vm730_vm4, %v1136_v52 }
 0x295   : > { %v648_v54 = vpop.permute.xlu1 %647 }
 0x29d   : > { %v640_v53 = vpop.permute.xlu2 %639 }
 0x29e   : > { %v663_v14 = vsel %vm662_vm2, %v2317_v11, %v640_v53  ;;  %v766_v11 = vstv %s504_s28  ;;  %s2177_s28 = smov 116  }
 0x29f   : > { %v664_v13 = vsel %vm578_vm0, %v663_v14, %v2402_v30 }
 0x2a0   : > { %v666_v55 = vsel %vm665_vm3, %v664_v13, %v648_v54 }
 0x2a1   : > { %698 = vxpose.xlu0.b32.start [1/2] (short) (narrow) %v666_v55, 16 }
 0x2a9   : > { %699 = vxpose.xlu0.b32.end [2/2] (short) (narrow) %v2414_v50, 16 }
 0x2e9   : > { %v968_v57 = vpop.f32.mrf.mxu3 }
 0x2ea   : > { %v974_v60 = vmul.f32 0.0625, %v968_v57 }
 0x2f1   : > { %v971_v58 = vpop.f32.mrf.mxu3 }
 0x2f2   : > { %v975_v59 = vmul.f32 0.0625, %v971_v58 }
 0x2f4   : > { %2116 = vtanh.f32 %v975_v59  ;;  %v2506_v59 = vpop.f32.mrf.mxu0 }
 0x2f5   : > { %2118 = vtanh.f32 %v974_v60 }
 0x2f9   : > { %v1174_v61 = vpop.f32.mrf.mxu3 }
 0x2fa   : > { %v2117_v62 = vpop.eup %2116  ;;  %v1180_v50 = vmul.f32 0.0625, %v1174_v61 }
 0x2fb   : > { %v979_v63 = vmul.f32 %v2117_v62, %v766_v11  ;;  %v2119_v30 = vpop.eup %2118 }
 0x2fc   : > { %v978_v4 = vmul.f32 %v2119_v30, %v766_v11 }
 0x2fd   : > { %984 = vrot.lane.b32.xlu1 %v979_v63, %s2744_s27 }
 0x301   : > { %v1177_v0 = vpop.f32.mrf.mxu3 }
 0x302   : > { %v1181_v2 = vmul.f32 0.0625, %v1177_v0 }
 0x304   : > { %2120 = vtanh.f32 %v1181_v2 }
 0x305   : > { %982 = vrot.lane.b32.xlu1 %v978_v4, %s2744_s27  ;;  %2122 = vtanh.f32 %v1180_v50 }
 0x30a   : > { %v2121_v5 = vpop.eup %2120 }
 0x30b   : > { %v1185_v6 = vmul.f32 %v2121_v5, %v766_v11  ;;  %v2123_v7 = vpop.eup %2122 }
 0x30c   : > { %v1184_v8 = vmul.f32 %v2123_v7, %v766_v11 }
 0x30d   : > { %1190 = vrot.lane.b32.xlu2 %v1185_v6, %s2173_s25  ;;  %612 = vrot.lane.b32.xlu1 %v611_v10, %s2736_s22 }
 0x315   : > { %1188 = vrot.lane.b32.xlu2 %v1184_v8, %s2173_s25 }
 0x317   : > { %630 = vrot.lane.b32.xlu0 %v611_v10, %s2744_s27 }
 0x345   : > { %v714_v9 = vpop.trf.xlu0 }
 0x346   : > { %1901 = vmatmul.msk.f32.vlgmr.msra.gmra.mxu1 %vm730_vm4, %v714_v9 }
 0x34d   : > { %v715_v12 = vpop.trf.xlu0 }
 0x34e   : > { %1902 = vmatmul.msk.f32.gmra.mxu1 %vm730_vm4, %v715_v12 }
 0x367   : > { %v1191_v15 = vpop.permute.xlu2 %1190 }
 0x368   : > { %v1195_v23 = vadd.f32 %v1191_v15, %v761_v16 }
 0x36f   : > { %v1189_v20 = vpop.permute.xlu2 %1188  ;;  %v985_v21 = vpop.permute.xlu1 %984 }
 0x370   : > { %v1194_v24 = vadd.f32 %v1189_v20, %v760_v19  ;;  %v989_v27 = vadd.f32 %v985_v21, %v761_v16 }
 0x372   : > { %v2031_v25 = vpack.i.bf16 %v1194_v24, %v1195_v23 }
 0x374   : > { %2032 = vrot.lane.b32.xlu1 %v2031_v25, %s2745_s23 }
 0x377   : > { %v983_v26 = vpop.permute.xlu1 %982 }
 0x378   : > { %v988_v28 = vadd.f32 %v983_v26, %v760_v19  ;;  %v511_v26 = vld [vmem:[%s2724_s4 + $0x10] sm:$0xff] }
 0x37a   : > { %v2026_v29 = vpack.i.bf16 %v988_v28, %v989_v27 }
 0x37c   : > { %618 = vrot.lane.b32.xlu1 %v611_v10, %s2740_s26  ;;  %2027 = vrot.lane.b32.xlu2 %v2026_v29, %s2736_s22 }
 0x37f   : > { %v613_v40 = vpop.permute.xlu1 %612 }
 0x380   : > { %v633_v44 = vsel %vm578_vm0, %v2299_v1, %v613_v40 }
 0x384   : > { %624 = vrot.lane.b32.xlu1 %v611_v10, %s2169_s21  ;;  %615 = vrot.lane.b32.xlu2 %v2299_v1, %s2745_s23 }
 0x389   : > { %v631_v53 = vpop.permute.xlu0 %630 }
 0x38c   : > { %621 = vrot.lane.b32.xlu2 %v2299_v1, %s2738_s24 }
 0x394   : > { %627 = vrot.lane.b32.xlu2 %v2299_v1, %s2173_s25 }
 0x3c3   : > { %v754_v31 = vpop.f32.mrf.mxu1 }
 0x3c4   : > { %v762_v32 = vmul.f32 0.0625, %v754_v31 }
 0x3c6   : > { %2124 = vtanh.f32 %v762_v32 }
 0x3cb   : > { %v757_v33 = vpop.f32.mrf.mxu1 }
 0x3cc   : > { %v763_v34 = vmul.f32 0.0625, %v757_v33  ;;  %v2125_v35 = vpop.eup %2124 }
 0x3cd   : > { %v767_v38 = vmul.f32 %v2125_v35, %v766_v11 }
 0x3ce   : > { %2126 = vtanh.f32 %v763_v34 }
 0x3cf   : > { %v769_v43 = vadd.f32 %v767_v38, %v760_v19  ;;  %v1274_v38 = vld [vmem:[%s2726_s6] sm:$0xff] }
 0x3d4   : > { %v2127_v36 = vpop.eup %2126 }
 0x3d5   : > { %v768_v37 = vmul.f32 %v2127_v36, %v766_v11 }
 0x3d6   : > { %v2028_v39 = vpop.permute.xlu2 %2027 }
 0x3d7   : > { %v770_v41 = vadd.f32 %v768_v37, %v761_v16  ;;  %v2029_v42 = vunpack.i.l.bf16 %v2028_v39  ;;  %v2030_v17 = vunpack.i.h.bf16 %v2028_v39 }
 0x3d9   : > { %797 = vmatpush.msra.mxu2 %v770_v41  ;;  %1012 = vmatpush.msrb.mxu1 %v2029_v42 }
 0x3db   : > { %798 = vmatpush.msra.mxu2 %v769_v43  ;;  %1013 = vmatpush.msrb.mxu1 %v2030_v17 }
 0x3dc   : > { %1903 = vmatmul.msk.f32.vlgmr.msra.gmra.mxu2 %vm730_vm4, %v633_v44  ;;  %1909 = vmatmul.msk.f32.vlgmr.msrb.gmra.mxu1 %vm730_vm4, %v633_v44 }
 0x3de   : > { %v616_v47 = vpop.permute.xlu2 %615 }
 0x3e6   : > { %v2033_v45 = vpop.permute.xlu1 %2032  ;;  %v622_v1 = vpop.permute.xlu2 %621 }
 0x3e7   : > { %v2034_v18 = vunpack.i.l.bf16 %v2033_v45  ;;  %v2035_v46 = vunpack.i.h.bf16 %v2033_v45 }
 0x3e9   : > { %1218 = vmatpush.msrb.mxu0 %v2034_v18 }
 0x3eb   : > { %1219 = vmatpush.msrb.mxu0 %v2035_v46 }
 0x3ec   : > { %1915 = vmatmul.msk.f32.vlgmr.msrb.gmra.mxu0 %vm730_vm4, %v633_v44 }
 0x3ee   : > { %v619_v48 = vpop.permute.xlu1 %618  ;;  %v628_v14 = vpop.permute.xlu2 %627 }
 0x3ef   : > { %v634_v49 = vsel %vm578_vm0, %v616_v47, %v619_v48  ;;  %v636_v54 = vsel %vm578_vm0, %v628_v14, %v631_v53 }
 0x3f0   : > { %1904 = vmatmul.msk.f32.gmra.mxu2 %vm730_vm4, %v634_v49  ;;  %1910 = vmatmul.msk.f32.gmra.mxu1 %vm730_vm4, %v634_v49 }
 0x3f4   : > { %1916 = vmatmul.msk.f32.gmra.mxu0 %vm730_vm4, %v634_v49 }
 0x3f6   : > { %v625_v51 = vpop.permute.xlu1 %624 }
 0x3f7   : > { %v635_v52 = vsel %vm578_vm0, %v622_v1, %v625_v51 }
 0x3f8   : > { %1905 = vmatmul.msk.f32.gmra.mxu2 %vm730_vm4, %v635_v52  ;;  %1911 = vmatmul.msk.f32.gmra.mxu1 %vm730_vm4, %v635_v52 }
 0x3fc   : > { %1917 = vmatmul.msk.f32.gmra.mxu0 %vm730_vm4, %v635_v52 }
 0x400   : > { %1906 = vmatmul.msk.f32.gmra.mxu2 %vm730_vm4, %v636_v54  ;;  %1912 = vmatmul.msk.f32.gmra.mxu1 %vm730_vm4, %v636_v54 }
 0x404   : > { %1918 = vmatmul.msk.f32.gmra.mxu0 %vm730_vm4, %v636_v54 }
 0x459   : > { %v1015_v13 = vpop.f32.mrf.mxu1 }
 0x45a   : > { %v1028_v57 = vrot.slane %v1015_v13, 4 }
 0x45f   : > { %v2503_v55 = vpop.f32.mrf.mxu2 }
 0x460   : > { %v813_v58 = vrot.slane %v2503_v55, 4 }
 0x462   : > { %v2036_v60 = vpack.i.bf16 %v813_v58, %v1028_v57 }
 0x464   : > { %2037 = vrot.lane.b32.xlu1 %v2036_v60, %s2744_s27 }
 0x469   : > { %v2509_v61 = vpop.f32.mrf.mxu0 }
 0x46a   : > { %v1234_v62 = vrot.slane %v2509_v61, 4 }
 0x46c   : > { %1235 = vrot.lane.b32.xlu1 %v1234_v62, %s2744_s27 }
 0x46d   : > { %v1018_v11 = vpop.f32.mrf.mxu1 }
 0x46e   : > { %v1036_v4 = vrot.slane %v1018_v11, 4 }
 0x471   : > { %v1224_v63 = vpop.f32.mrf.mxu0 }
 0x472   : > { %v1242_v50 = vrot.slane %v1224_v63, 4 }
 0x473   : > { %v803_v30 = vpop.f32.mrf.mxu2 }
 0x474   : > { %v2041_v0 = vpack.i.bf16 %v803_v30, %v1018_v11  ;;  %1239 = vrot.lane.b32.xlu1 %v1224_v63, %s2173_s25  ;;  %v821_v2 = vrot.slane %v803_v30, 4 }
 0x475   : > { %v1021_v7 = vpop.f32.mrf.mxu1 }
 0x476   : > { %2042 = vrot.lane.b32.xlu2 %v2041_v0, %s2173_s25  ;;  %v2046_v5 = vpack.i.bf16 %v821_v2, %v1036_v4  ;;  %v1044_v12 = vrot.slane %v1021_v7, 4 }
 0x479   : > { %v1227_v8 = vpop.f32.mrf.mxu0 }
 0x47a   : > { %v1250_v15 = vrot.slane %v1227_v8, 4 }
 0x47b   : > { %v806_v6 = vpop.f32.mrf.mxu2 }
 0x47c   : > { %1243 = vrot.lane.b32.xlu1 %v1242_v50, %s2169_s21  ;;  %v2051_v9 = vpack.i.bf16 %v806_v6, %v1021_v7  ;;  %v829_v10 = vrot.slane %v806_v6, 4 }
 0x47d   : > { %v1024_v20 = vpop.f32.mrf.mxu1 }
 0x47e   : > { %2047 = vrot.lane.b32.xlu2 %v2046_v5, %s2169_s21  ;;  %v2056_v16 = vpack.i.bf16 %v829_v10, %v1044_v12  ;;  %v1052_v25 = vrot.slane %v1024_v20, 4 }
 0x481   : > { %v1230_v21 = vpop.f32.mrf.mxu0 }
 0x482   : > { %v1258_v28 = vrot.slane %v1230_v21, 4 }
 0x483   : > { %v809_v19 = vpop.f32.mrf.mxu2 }
 0x484   : > { %1247 = vrot.lane.b32.xlu1 %v1227_v8, %s2738_s24  ;;  %v2061_v23 = vpack.i.bf16 %v809_v19, %v1024_v20  ;;  %v837_v24 = vrot.slane %v809_v19, 4  ;;  %v1273_v19 = vld [vmem:[%s2725_s5] sm:$0xff] }
 0x486   : > { %2052 = vrot.lane.b32.xlu2 %v2051_v9, %s2738_s24  ;;  %v2066_v27 = vpack.i.bf16 %v837_v24, %v1052_v25 }
 0x48c   : > { %1251 = vrot.lane.b32.xlu1 %v1250_v15, %s2740_s26 }
 0x48e   : > { %2057 = vrot.lane.b32.xlu2 %v2056_v16, %s2740_s26 }
 0x494   : > { %1255 = vrot.lane.b32.xlu1 %v1230_v21, %s2745_s23 }
 0x496   : > { %2062 = vrot.lane.b32.xlu2 %v2061_v23, %s2745_s23 }
 0x49c   : > { %525 = vperm.xlu1 %1990, %v511_v26  }
 0x49e   : > { %2067 = vrot.lane.b32.xlu2 %v2066_v27, %s2736_s22 }
 0x4a6   : > { %1259 = vrot.lane.b32.xlu2 %v1258_v28, %s2736_s22 }
 0x4ae   : > { %1277 = vperm.xlu2 %2071, %v1274_v38  }
 0x4d0   : > { %v2043_v29 = vpop.permute.xlu2 %2042 }
 0x4d1   : > { %v2044_v43 = vunpack.i.l.bf16 %v2043_v29  ;;  %v2045_v53 = vunpack.i.h.bf16 %v2043_v29 }
 0x4d6   : > { %v2038_v31 = vpop.permute.xlu1 %2037 }
 0x4d7   : > { %v2039_v40 = vunpack.i.l.bf16 %v2038_v31  ;;  %v2040_v17 = vunpack.i.h.bf16 %v2038_v31 }
 0x4d8   : > { %v2048_v32 = vpop.permute.xlu2 %2047 }
 0x4d9   : > { %v1056_v42 = vsel %vm730_vm4, %v1015_v13, %v2039_v40  ;;  %v2049_v44 = vunpack.i.l.bf16 %v2048_v32  ;;  %v841_v1 = vsel %vm730_vm4, %v2503_v55, %v2040_v17  ;;  %v2050_v54 = vunpack.i.h.bf16 %v2048_v32 }
 0x4da   : > { %v1057_v45 = vsel %vm842_vm5, %v1056_v42, %v2044_v43  ;;  %v843_v57 = vsel %vm842_vm5, %v841_v1, %v2045_v53 }
 0x4db   : > { %v1058_v51 = vsel %vm844_vm6, %v1057_v45, %v2049_v44  ;;  %v845_v2 = vsel %vm844_vm6, %v843_v57, %v2050_v54 }
 0x4de   : > { %v1236_v33 = vpop.permute.xlu1 %1235 }
 0x4df   : > { %v1262_v58 = vsel %vm730_vm4, %v2509_v61, %v1236_v33 }
 0x4e0   : > { %v2053_v34 = vpop.permute.xlu2 %2052 }
 0x4e1   : > { %v2054_v18 = vunpack.i.l.bf16 %v2053_v34  ;;  %v2055_v60 = vunpack.i.h.bf16 %v2053_v34 }
 0x4e3   : > { %v1059_v14 = vsel %vm846_vm7, %v1058_v51, %v2054_v18  ;;  %v847_v5 = vsel %vm846_vm7, %v845_v2, %v2055_v60 }
 0x4e6   : > { %v1240_v35 = vpop.permute.xlu1 %1239 }
 0x4e7   : > { %v1263_v55 = vsel %vm842_vm5, %v1262_v58, %v1240_v35 }
 0x4e8   : > { %v2058_v36 = vpop.permute.xlu2 %2057 }
 0x4e9   : > { %v2059_v47 = vunpack.i.l.bf16 %v2058_v36  ;;  %v2060_v11 = vunpack.i.h.bf16 %v2058_v36 }
 0x4eb   : > { %v1060_v13 = vsel %vm848_vm8, %v1059_v14, %v2059_v47  ;;  %v849_v8 = vsel %vm848_vm8, %v847_v5, %v2060_v11 }
 0x4ee   : > { %v1244_v37 = vpop.permute.xlu1 %1243 }
 0x4ef   : > { %v1264_v30 = vsel %vm844_vm6, %v1263_v55, %v1244_v37 }
 0x4f0   : > { %v2063_v39 = vpop.permute.xlu2 %2062 }
 0x4f1   : > { %v2064_v48 = vunpack.i.l.bf16 %v2063_v39  ;;  %v2065_v0 = vunpack.i.h.bf16 %v2063_v39 }
 0x4f3   : > { %v1061_v62 = vsel %vm850_vm9, %v1060_v13, %v2064_v48  ;;  %v851_v15 = vsel %vm850_vm9, %v849_v8, %v2065_v0 }
 0x4f6   : > { %v1248_v41 = vpop.permute.xlu1 %1247 }
 0x4f7   : > { %v1265_v4 = vsel %vm846_vm7, %v1264_v30, %v1248_v41 }
 0x4f8   : > { %v2068_v46 = vpop.permute.xlu2 %2067 }
 0x4f9   : > { %v2069_v52 = vunpack.i.l.bf16 %v2068_v46  ;;  %v2070_v50 = vunpack.i.h.bf16 %v2068_v46 }
 0x4fb   : > { %v1062_v63 = vsel %vm852_vm10, %v1061_v62, %v2069_v52  ;;  %v853_v16 = vsel %vm852_vm10, %v851_v15, %v2070_v50  ;;  %v1394_v62 = vld [vmem:[%s2727_s7] sm:$0x1] }
 0x4fc   : > { %v1270_v7 = vrot.slane %v1062_v63, 4 }
 0x4fe   : > { %v1252_v49 = vpop.permute.xlu1 %1251  ;;  %v1272_v20 = vsel %vm578_vm0, %v853_v16, %v1270_v7 }
 0x4ff   : > { %v1266_v61 = vsel %vm848_vm8, %v1265_v4, %v1252_v49 }
 0x500   : > { %v1260_v9 = vpop.permute.xlu2 %1259 }
 0x506   : > { %v1256_v6 = vpop.permute.xlu1 %1255 }
 0x507   : > { %v1267_v10 = vsel %vm850_vm9, %v1266_v61, %v1256_v6 }
 0x508   : > { %v1268_v12 = vsel %vm852_vm10, %v1267_v10, %v1260_v9  ;;  %v1278_v25 = vpop.permute.xlu2 %1277 }
 0x509   : > { %1919 = vmatpush.msk.msrb.mxu2 %vm578_vm0, %v1268_v12 }
 0x50b   : > { %1302 = vmatpush.msrb.mxu2 %v1272_v20 }
 0x50c   : > { %1920 = vmatmul.msk.f32.vlgmr.msrb.gmra.mxu2 %vm1280_vm11, %v1273_v19 }
 0x50e   : > { %v526_v21 = vpop.permute.xlu1 %525 }
 0x50f   : > { %v2561_v23 = vadd.f32 %v2506_v59, %v526_v21 }
 0x511   : > { %v1308_v24 = vrot.slane %v2561_v23, 4 }
 0x513   : > { %v1309_v28 = vsel %vm578_vm0, %v2382_v22, %v1308_v24 }
 0x58f   : > { %v1304_v26 = vpop.f32.mrf.mxu2 }
 0x590   : > { %v1305_v27 = vadd.f32 %v1304_v26, %v1278_v25 }
 0x592   : > { %v1311_v29 = vadd.f32 %v1309_v28, %v1305_v27 }
 0x594   : > { %v2568_v31 = vmax.f32 %v1311_v29, 0.0 }
 0x596   : > { %1318 = vrot.lane.b32.xlu2 %v2568_v31, %s2745_s23  ;;  %1314 = vrot.lane.b32.xlu1 %v2568_v31, %s2736_s22  ;;  %s2182_s22 = smov 117  }
 0x59e   : > { %1326 = vrot.lane.b32.xlu2 %v2568_v31, %s2738_s24  ;;  %1322 = vrot.lane.b32.xlu1 %v2568_v31, %s2740_s26  ;;  %s2184_s24 = smov 121   ;;  %s2185_s26 = smov 120  }
 0x5a6   : > { %1334 = vrot.lane.b32.xlu2 %v2568_v31, %s2173_s25  ;;  %1330 = vrot.lane.b32.xlu1 %v2568_v31, %s2169_s21 }
 0x5ae   : > { %1338 = vrot.lane.b32.xlu1 %v2568_v31, %s2744_s27 }
 0x5f0   : > { %v1319_v59 = vpop.permute.xlu2 %1318 }
 0x5f8   : > { %v1327_v35 = vpop.permute.xlu2 %1326 }
 0x600   : > { %v1335_v40 = vpop.permute.xlu2 %1334 }
 0x608   : > { %v1315_v22 = vpop.permute.xlu1 %1314 }
 0x609   : > { %v1317_v32 = vadd.f32 %v1315_v22, %v2568_v31 }
 0x60b   : > { %v1321_v34 = vadd.f32 %v1319_v59, %v1317_v32 }
 0x610   : > { %v1323_v33 = vpop.permute.xlu1 %1322 }
 0x611   : > { %v1325_v36 = vadd.f32 %v1323_v33, %v1321_v34 }
 0x613   : > { %v1329_v38 = vadd.f32 %v1327_v35, %v1325_v36 }
 0x618   : > { %v1331_v37 = vpop.permute.xlu1 %1330 }
 0x619   : > { %v1333_v39 = vadd.f32 %v1331_v37, %v1329_v38 }
 0x61b   : > { %v1337_v41 = vadd.f32 %v1335_v40, %v1333_v39 }
 0x620   : > { %v1339_v42 = vpop.permute.xlu1 %1338 }
 0x621   : > { %v1341_v43 = vadd.f32 %v1339_v42, %v1337_v41 }
 0x623   : > { %v1342_v17 = vmul.f32 0.125, %v1341_v43 }
 0x625   : > { %1344 = vrot.lane.b32.xlu2 %v1342_v17, %s2176_s20  ;;  %s2183_s20 = smov 122  }
 0x67f   : > { %v1345_v44 = vpop.permute.xlu2 %1344 }
 0x680   : > { %v1348_v45 = vsel %vm1347_vm12, 0.0, %v1345_v44 }
 0x681   : > { %v1350_v18 = vsel %vm1349_vm13, %v1348_v45, 0.0 }
 0x682   : > { %1385 = vrot.lane.b32.xlu0 %v1350_v18, %s2177_s28  ;;  %1388 = vrot.lane.b32.xlu2 %v1350_v18, %s2178_s29  ;;  %s2186_s28 = smov 125   ;;  %s2187_s29 = smov 124  }
 0x683   : > { %1391 = vrot.lane.b32.xlu1 %v1350_v18, %s2179_s30  ;;  %s2188_s30 = smov 123  }
 0x68a   : > { %1376 = vrot.lane.b32.xlu0 %v1350_v18, %s2180_s16  ;;  %1379 = vrot.lane.b32.xlu2 %v1350_v18, %s2181_s17  ;;  %s2743_s16 = smov 127   ;;  %s2748_s17 = smov 112  }
 0x68b   : > { %1382 = vrot.lane.b32.xlu1 %v1350_v18, %s2182_s22  ;;  %s2742_s22 = smov 126  }
 0x692   : > { %1367 = vrot.lane.b32.xlu0 %v1350_v18, %s2183_s20  ;;  %1370 = vrot.lane.b32.xlu2 %v1350_v18, %s2184_s24 }
 0x693   : > { %1373 = vrot.lane.b32.xlu1 %v1350_v18, %s2185_s26 }
 0x69a   : > { %1358 = vrot.lane.b32.xlu0 %v1350_v18, %s2186_s28  ;;  %1361 = vrot.lane.b32.xlu2 %v1350_v18, %s2187_s29 }
 0x69b   : > { %1364 = vrot.lane.b32.xlu1 %v1350_v18, %s2188_s30 }
 0x6a2   : > { %1352 = vrot.lane.b32.xlu2 %v1350_v18, %s2743_s16  ;;  %s1894_s16 = sld [smem:[#allocation2 + $0x1]] }
 0x6a3   : > { %1355 = vrot.lane.b32.xlu1 %v1350_v18, %s2742_s22  ;;  %s2747_s22 = smov 64  }
 0x6a8   : > { %v1395_v55 = vstv %s1894_s16  ;;  %s2746_s16 = smov 80  }
 0x6dc   : > { %v1389_v46 = vpop.permute.xlu2 %1388 }
 0x6e4   : > { %v1380_v49 = vpop.permute.xlu2 %1379 }
 0x6ec   : > { %v1371_v52 = vpop.permute.xlu2 %1370 }
 0x6f4   : > { %v1386_v47 = vpop.permute.xlu0 %1385  ;;  %v1362_v54 = vpop.permute.xlu2 %1361 }
 0x6f5   : > { %v1392_v48 = vpop.permute.xlu1 %1391 }
 0x6f6   : > { %1401 = vmatpush.msrb.mxu3 %v1392_v48 }
 0x6f8   : > { %1402 = vmatpush.msrb.mxu3 %v1389_v46 }
 0x6fa   : > { %1403 = vmatpush.msrb.mxu3 %v1386_v47 }
 0x6fc   : > { %v1377_v1 = vpop.permute.xlu0 %1376  ;;  %v1353_v60 = vpop.permute.xlu2 %1352 }
 0x6fd   : > { %v1383_v51 = vpop.permute.xlu1 %1382 }
 0x6fe   : > { %1404 = vmatpush.msrb.mxu3 %v1383_v51 }
 0x700   : > { %1405 = vmatpush.msrb.mxu3 %v1380_v49 }
 0x702   : > { %1406 = vmatpush.msrb.mxu3 %v1377_v1 }
 0x704   : > { %v1368_v14 = vpop.permute.xlu0 %1367 }
 0x705   : > { %v1374_v53 = vpop.permute.xlu1 %1373 }
 0x706   : > { %1407 = vmatpush.msrb.mxu3 %v1374_v53 }
 0x708   : > { %1408 = vmatpush.msrb.mxu3 %v1371_v52 }
 0x70a   : > { %1409 = vmatpush.msrb.mxu3 %v1368_v14 }
 0x70c   : > { %v1359_v57 = vpop.permute.xlu0 %1358 }
 0x70d   : > { %v1365_v13 = vpop.permute.xlu1 %1364 }
 0x70e   : > { %1410 = vmatpush.msrb.mxu3 %v1365_v13 }
 0x710   : > { %1411 = vmatpush.msrb.mxu3 %v1362_v54 }
 0x712   : > { %1412 = vmatpush.msrb.mxu3 %v1359_v57 }
 0x715   : > { %v1356_v58 = vpop.permute.xlu1 %1355 }
 0x716   : > { %1413 = vmatpush.msrb.mxu3 %v1356_v58 }
 0x718   : > { %1414 = vmatpush.msrb.mxu3 %v1353_v60 }
 0x71a   : > { %1921 = vmatpush.msk.msrb.mxu3 %vm1349_vm13, %v1348_v45 }
 0x71b   : > { %1922 = vmatmul.msk.f32.vlgmr.msrb.gmra.mxu3 %vm1396_vm14, %v1394_v62  ;;  %vm1517_vm14 = vcmask 7168  }
 0x79e   : > { %v1417_v11 = vpop.f32.mrf.mxu3 }
 0x79f   : > { %v1418_v63 = vadd.f32 %v1417_v11, %v1395_v55 }
 0x7a1   : > { %v1923_v30 = vmul.f32 -1.442695, %v1418_v63 }
 0x7a3   : > { %2128 = vpow2.f32 %v1923_v30 }
 0x7a9   : > { %v2129_v0 = vpop.eup %2128 }
 0x7aa   : > { %v1423_v2 = vadd.f32 1.0, %v2129_v0 }
 0x7ac   : > { %2130 = vrcp.f32 %v1423_v2  ;;  %v1435_v61 = vand.u32 2147483648, %v1423_v2  ;;  %v1433_v7 = vand.u32 2147483647, %v1423_v2  ;;  %vm1429_vm2 = vweird.f32 %v1423_v2 }
 0x7ae   : > { %v1436_v9 = vor.u32 1.1754944e-38, %v1435_v61  ;;  %vm1434_vm13 = vcmp.eq.f32.partialorder %v1433_v7, 8.507059e+37 }
 0x7b2   : > { %v2131_v4 = vpop.eup %2130 }
 0x7b3   : > { %v1425_v50 = vmul.f32 %v2131_v4, %v1423_v2  ;;  %vm1430_vm15 = vweird.f32 %v2131_v4 }
 0x7b4   : > { %vm1431_vm3 = vmor %vm1429_vm2, %vm1430_vm15  ;;  %vm1519_vm15 = vcmask 15360   ;;  %vm1521_vm2 = vcmask 23552  }
 0x7b5   : > { %v1426_v5 = vsub.f32 1.0, %v1425_v50 }
 0x7b7   : > { %v1427_v6 = vmul.f32 %v2131_v4, %v1426_v5 }
 0x7b9   : > { %v1428_v8 = vadd.f32 %v2131_v4, %v1427_v6 }
 0x7bb   : > { %v1432_v10 = vsel %vm1431_vm3, %v2131_v4, %v1428_v8  ;;  %vm1524_vm3 = vcmask 39936  }
 0x7bc   : > { %v1437_v12 = vsel %vm1434_vm13, %v1436_v9, %v1432_v10  ;;  %vm1526_vm13 = vcmask 48128  }
 0x7bd   : > { %1446 = vrot.lane.b32.xlu2 %v1437_v12, %s2169_s21  ;;  %1443 = vrot.lane.b32.xlu1 %v1437_v12, %s2173_s25 }
 0x7be   : > { %1440 = vrot.lane.b32.xlu0 %v1437_v12, %s2744_s27 }
 0x7c5   : > { %1455 = vrot.lane.b32.xlu2 %v1437_v12, %s2745_s23  ;;  %1452 = vrot.lane.b32.xlu1 %v1437_v12, %s2746_s16 }
 0x7c6   : > { %1449 = vrot.lane.b32.xlu0 %v1437_v12, %s2747_s22 }
 0x7ce   : > { %1458 = vrot.lane.b32.xlu0 %v1437_v12, %s2748_s17 }
 0x817   : > { %v1447_v20 = vpop.permute.xlu2 %1446 }
 0x81f   : > { %v1456_v22 = vpop.permute.xlu2 %1455 }
 0x82f   : > { %v1444_v15 = vpop.permute.xlu1 %1443 }
 0x830   : > { %v1441_v16 = vpop.permute.xlu0 %1440 }
 0x831   : > { %v1461_v19 = vsel %vm730_vm4, %v1437_v12, %v1441_v16  ;;  %v1561_v12 = vld [vmem:[%s2728_s8] sm:$0x1]  ;;  %v2193_v16 = vmov 1  }
 0x832   : > { %v1462_v21 = vsel %vm842_vm5, %v1461_v19, %v1444_v15  ;;  %v2192_v15 = vmov 2   ;;  %2072 = vset.pattern.permute.xlu1 %v2193_v16 }
 0x833   : > { %v1463_v26 = vsel %vm844_vm6, %v1462_v21, %v1447_v20  ;;  %2073 = vset.pattern.permute.xlu0 %v2192_v15 }
 0x837   : > { %v1453_v27 = vpop.permute.xlu1 %1452 }
 0x838   : > { %v1450_v25 = vpop.permute.xlu0 %1449 }
 0x839   : > { %v1464_v28 = vsel %vm846_vm7, %v1463_v26, %v1450_v25 }
 0x83a   : > { %v1465_v29 = vsel %vm848_vm8, %v1464_v28, %v1453_v27 }
 0x83b   : > { %v1466_v59 = vsel %vm850_vm9, %v1465_v29, %v1456_v22 }
 0x840   : > { %v1459_v32 = vpop.permute.xlu0 %1458 }
 0x841   : > { %v1467_v33 = vsel %vm852_vm10, %v1466_v59, %v1459_v32 }
 0x842   : > { %v1468_v34 = vadd.f32 1.0, %v1467_v33 }
 0x844   : > { %v1469_v35 = vperm.slane %v1468_v34, 0 }
 0x846   : > { %v2614_v36 = vmul.f32 %v1469_v35, %v2568_v31 }
 0x848   : > { %1487 = vrot.lane.b32.xlu0 %v2614_v36, %s2746_s16  ;;  %1481 = vrot.lane.b32.xlu2 %v2614_v36, %s2745_s23  ;;  %v1471_v31 = vsel %vm730_vm4, %v2614_v36, 0.0  ;;  %s2749_s23 = smov 127  }
 0x849   : > { %1475 = vrot.lane.b32.xlu1 %v2614_v36, %s2748_s17 }
 0x850   : > { %1505 = vrot.lane.b32.xlu0 %v2614_v36, %s2173_s25  ;;  %1499 = vrot.lane.b32.xlu2 %v2614_v36, %s2169_s21 }
 0x851   : > { %1493 = vrot.lane.b32.xlu1 %v2614_v36, %s2747_s22 }
 0x859   : > { %1511 = vrot.lane.b32.xlu1 %v2614_v36, %s2744_s27  ;;  %s2191_s27 = smov 4  }
 0x879   : > { %1472 = vadd.xlane.f32.xlu2 %v1471_v31 }
 0x8a2   : > { %v1482_v37 = vpop.permute.xlu2 %1481 }
 0x8a3   : > { %v1484_v38 = vsel %vm730_vm4, %v1482_v37, 0.0 }
 0x8a4   : > { %1485 = vadd.xlane.f32.xlu1 %v1484_v38  ;;  %v2194_v38 = vmov 7  }
 0x8aa   : > { %v1500_v43 = vpop.permute.xlu2 %1499 }
 0x8ab   : > { %v1502_v18 = vsel %vm730_vm4, %v1500_v43, 0.0  ;;  %v2198_v43 = vmov 5  }
 0x8ba   : > { %v1488_v39 = vpop.permute.xlu0 %1487 }
 0x8bb   : > { %v1476_v40 = vpop.permute.xlu1 %1475  ;;  %v1490_v41 = vsel %vm730_vm4, %v1488_v39, 0.0  ;;  %v2195_v39 = vmov 4  }
 0x8bc   : > { %v1478_v42 = vsel %vm730_vm4, %v1476_v40, 0.0  ;;  %1491 = vadd.xlane.f32.xlu2 %v1490_v41  ;;  %v2196_v40 = vmov 3   ;;  %v512_v41 = vld [vmem:[%s2724_s4 + $0x18] sm:$0xf] }
 0x8bd   : > { %1479 = vadd.xlane.f32.xlu0 %v1478_v42  ;;  %v2197_v42 = vmov 6  }
 0x8c2   : > { %v1506_v17 = vpop.permute.xlu0 %1505 }
 0x8c3   : > { %v1494_v44 = vpop.permute.xlu1 %1493  ;;  %v1508_v45 = vsel %vm730_vm4, %v1506_v17, 0.0 }
 0x8c4   : > { %1509 = vadd.xlane.f32.xlu1 %v1508_v45  ;;  %v1496_v46 = vsel %vm730_vm4, %v1494_v44, 0.0  ;;  %1503 = vadd.xlane.f32.xlu2 %v1502_v18 }
 0x8c5   : > { %1497 = vadd.xlane.f32.xlu0 %v1496_v46 }
 0x8cb   : > { %v1512_v47 = vpop.permute.xlu1 %1511 }
 0x8cc   : > { %v1514_v48 = vsel %vm730_vm4, %v1512_v47, 0.0 }
 0x8cd   : > { %1515 = vadd.xlane.f32.xlu0 %v1514_v48 }
 0x8ec   : > { %v1473_v49 = vpop.xlane.xlu2 %1472 }
 0x917   : > { %v1486_v53 = vpop.xlane.xlu1 %1485 }
 0x92f   : > { %v1492_v51 = vpop.xlane.xlu2 %1491 }
 0x930   : > { %v1480_v1 = vpop.xlane.xlu0 %1479 }
 0x931   : > { %v1518_v52 = vsel %vm1517_vm14, %v1473_v49, %v1480_v1 }
 0x932   : > { %v1520_v14 = vsel %vm1519_vm15, %v1518_v52, %v1486_v53 }
 0x933   : > { %v1522_v13 = vsel %vm1521_vm2, %v1520_v14, %v1492_v51 }
 0x937   : > { %v1504_v58 = vpop.xlane.xlu2 %1503  ;;  %v1510_v62 = vpop.xlane.xlu1 %1509 }
 0x938   : > { %v1498_v54 = vpop.xlane.xlu0 %1497 }
 0x939   : > { %v1523_v57 = vsel %vm565_vm1, %v1522_v13, %v1498_v54 }
 0x93a   : > { %v1525_v60 = vsel %vm1524_vm3, %v1523_v57, %v1504_v58  ;;  %vm1654_vm3 = vcmask 64512  }
 0x93b   : > { %v1527_v11 = vsel %vm1526_vm13, %v1525_v60, %v1510_v62 }
 0x940   : > { %v1516_v55 = vpop.xlane.xlu0 %1515 }
 0x941   : > { %v1528_v63 = vsel %vm1347_vm12, %v1527_v11, %v1516_v55  ;;  %vm1563_vm12 = vcmask 588800   ;;  %v1652_v55 = vld [vmem:[%s2729_s9] sm:$0xf] }
 0x942   : > { %v1529_v30 = vmul.f32 0.0625, %v1528_v63  ;;  %v1653_v11 = vld [vmem:[%s2730_s10] sm:$0xf] }
 0x944   : > { %1531 = vrot.lane.b32.xlu2 %v1529_v30, %s2191_s27  ;;  %s2750_s27 = smov 126  }
 0x99e   : > { %v1532_v0 = vpop.permute.xlu2 %1531 }
 0x99f   : > { %v1534_v2 = vsel %vm565_vm1, 0.0, %v1532_v0 }
 0x9a0   : > { %v1535_v4 = vsel %vm1280_vm11, %v1534_v2, 0.0 }
 0x9a1   : > { %1552 = vrot.lane.b32.xlu2 %v1535_v4, %s2183_s20  ;;  %1555 = vrot.lane.b32.xlu0 %v1535_v4, %s2184_s24  ;;  %s2752_s24 = smov 16  }
 0x9a2   : > { %1558 = vrot.lane.b32.xlu1 %v1535_v4, %s2185_s26  ;;  %s1895_s26 = sld [smem:[#allocation2 + $0x2]] }
 0x9a8   : > { %v1562_v19 = vstv %s1895_s26 }
 0x9a9   : > { %1543 = vrot.lane.b32.xlu2 %v1535_v4, %s2186_s28  ;;  %1546 = vrot.lane.b32.xlu0 %v1535_v4, %s2187_s29  ;;  %s2751_s29 = smov 96  }
 0x9aa   : > { %1549 = vrot.lane.b32.xlu1 %v1535_v4, %s2188_s30 }
 0x9b1   : > { %1537 = vrot.lane.b32.xlu0 %v1535_v4, %s2749_s23 }
 0x9b2   : > { %1540 = vrot.lane.b32.xlu1 %v1535_v4, %s2750_s27 }
 0x9fb   : > { %v1553_v61 = vpop.permute.xlu2 %1552 }
 0xa03   : > { %v1544_v8 = vpop.permute.xlu2 %1543 }
 0xa13   : > { %v1556_v50 = vpop.permute.xlu0 %1555 }
 0xa14   : > { %v1559_v5 = vpop.permute.xlu1 %1558 }
 0xa15   : > { %1574 = vmatpush.msra.mxu1 %v1559_v5 }
 0xa17   : > { %1575 = vmatpush.msra.mxu1 %v1556_v50 }
 0xa19   : > { %1576 = vmatpush.msra.mxu1 %v1553_v61 }
 0xa1b   : > { %v1547_v6 = vpop.permute.xlu0 %1546 }
 0xa1c   : > { %v1550_v7 = vpop.permute.xlu1 %1549 }
 0xa1d   : > { %1577 = vmatpush.msra.mxu1 %v1550_v7 }
 0xa1f   : > { %1578 = vmatpush.msra.mxu1 %v1547_v6 }
 0xa21   : > { %1579 = vmatpush.msra.mxu1 %v1544_v8 }
 0xa23   : > { %v1538_v10 = vpop.permute.xlu0 %1537 }
 0xa24   : > { %v1541_v9 = vpop.permute.xlu1 %1540 }
 0xa25   : > { %1580 = vmatpush.msra.mxu1 %v1541_v9 }
 0xa27   : > { %1581 = vmatpush.msra.mxu1 %v1538_v10 }
 0xa29   : > { %1924 = vmatpush.msk.msra.mxu1 %vm1280_vm11, %v1534_v2  ;;  %v1680_v2 = vld [vmem:[%s2732_s12] sm:$0xff] }
 0xa2a   : > { %1925 = vmatmul.msk.f32.vlgmr.msra.gmra.mxu1 %vm1563_vm12, %v1561_v12 }
 0xaa7   : > { %v1584_v20 = vpop.f32.mrf.mxu1 }
 0xaa8   : > { %v1585_v21 = vadd.f32 %v1584_v20, %v1562_v19 }
 0xaaa   : > { %v1926_v25 = vmul.f32 -1.442695, %v1585_v21 }
 0xaac   : > { %2132 = vpow2.f32 %v1926_v25 }
 0xab2   : > { %v2133_v26 = vpop.eup %2132 }
 0xab3   : > { %v1590_v27 = vadd.f32 1.0, %v2133_v26 }
 0xab5   : > { %2134 = vrcp.f32 %v1590_v27  ;;  %v1602_v59 = vand.u32 2147483648, %v1590_v27  ;;  %v1600_v33 = vand.u32 2147483647, %v1590_v27  ;;  %vm1596_vm14 = vweird.f32 %v1590_v27 }
 0xab7   : > { %v1603_v35 = vor.u32 1.1754944e-38, %v1602_v59  ;;  %vm1601_vm2 = vcmp.eq.f32.partialorder %v1600_v33, 8.507059e+37 }
 0xabb   : > { %v2135_v28 = vpop.eup %2134 }
 0xabc   : > { %v1592_v29 = vmul.f32 %v2135_v28, %v1590_v27  ;;  %vm1597_vm11 = vweird.f32 %v2135_v28 }
 0xabd   : > { %vm1598_vm15 = vmor %vm1596_vm14, %vm1597_vm11 }
 0xabe   : > { %v1593_v22 = vsub.f32 1.0, %v1592_v29 }
 0xac0   : > { %v1594_v32 = vmul.f32 %v2135_v28, %v1593_v22 }
 0xac2   : > { %v1595_v34 = vadd.f32 %v2135_v28, %v1594_v32  ;;  %v1784_v32 = vld [vmem:[%s2734_s14] sm:$0xff] }
 0xac4   : > { %v1599_v31 = vsel %vm1598_vm15, %v2135_v28, %v1595_v34 }
 0xac5   : > { %v1604_v37 = vsel %vm1601_vm2, %v1603_v35, %v1599_v31 }
 0xac6   : > { %1616 = vperm.xlu0 %2073, %v1604_v37   ;;  %1612 = vperm.xlu1 %2072, %v1604_v37  }
 0xac7   : > { %1608 = vperm.xlu2 %2071, %v1604_v37  }
 0xace   : > { %2078 = vset.pattern.permute.xlu0 %v2194_v38  ;;  %2075 = vset.pattern.permute.xlu1 %v2195_v39 }
 0xacf   : > { %2074 = vset.pattern.permute.xlu2 %v2196_v40  ;;  %1636 = vperm.xlu0 %2078, %v1604_v37  }
 0xad0   : > { %1624 = vperm.xlu1 %2075, %v1604_v37   ;;  %1620 = vperm.xlu2 %2074, %v1604_v37  }
 0xad7   : > { %2080 = vset.pattern.permute.xlu0 %v2168_v3 }
 0xad8   : > { %2077 = vset.pattern.permute.xlu1 %v2197_v42  ;;  %2076 = vset.pattern.permute.xlu2 %v2198_v43 }
 0xad9   : > { %530 = vperm.xlu0 %2080, %v512_v41   ;;  %1632 = vperm.xlu1 %2077, %v1604_v37  }
 0xada   : > { %1628 = vperm.xlu2 %2076, %v1604_v37  }
 0xae1   : > { %2079 = vset.pattern.permute.xlu1 %v2168_v3 }
 0xb21   : > { %v1609_v17 = vpop.permute.xlu2 %1608 }
 0xb2a   : > { %v1621_v45 = vpop.permute.xlu2 %1620 }
 0xb34   : > { %v1629_v51 = vpop.permute.xlu2 %1628 }
 0xb38   : > { %v1613_v44 = vpop.permute.xlu1 %1612  ;;  %v1617_v46 = vpop.permute.xlu0 %1616 }
 0xb39   : > { %v1639_v18 = vsel %vm730_vm4, %v1609_v17, %v1613_v44 }
 0xb3a   : > { %v1640_v48 = vsel %vm842_vm5, %v1639_v18, %v1617_v46 }
 0xb3b   : > { %v1641_v49 = vsel %vm844_vm6, %v1640_v48, %v1621_v45 }
 0xb41   : > { %v1637_v14 = vpop.permute.xlu0 %1636 }
 0xb42   : > { %v1625_v47 = vpop.permute.xlu1 %1624 }
 0xb43   : > { %v1642_v1 = vsel %vm846_vm7, %v1641_v49, %v1625_v47 }
 0xb44   : > { %v1643_v53 = vsel %vm848_vm8, %v1642_v1, %v1629_v51 }
 0xb4b   : > { %v1633_v52 = vpop.permute.xlu1 %1632  ;;  %v531_v33 = vpop.permute.xlu0 %530 }
 0xb4c   : > { %v1644_v3 = vsel %vm850_vm9, %v1643_v53, %v1633_v52 }
 0xb4d   : > { %v1645_v54 = vsel %vm852_vm10, %v1644_v3, %v1637_v14 }
 0xb4e   : > { %v1646_v13 = vadd.f32 1.0, %v1645_v54 }
 0xb50   : > { %v1647_v57 = vperm.slane %v1646_v13, 0 }
 0xb52   : > { %v1648_v58 = vmul.f32 %v1647_v57, %v2614_v36  ;;  %v1679_v36 = vld [vmem:[%s2731_s11] sm:$0xff] }
 0xb54   : > { %1649 = vadd.xlane.f32.xlu2 %v1648_v58 }
 0xbc7   : > { %v1650_v60 = vpop.xlane.xlu2 %1649 }
 0xbc8   : > { %v1651_v62 = vmul.f32 0.0078125, %v1650_v60  ;;  %v1783_v60 = vld [vmem:[%s2733_s13] sm:$0xff] }
 0xbca   : > { %1673 = vmatpush.msra.mxu2 %v1651_v62  ;;  %v609_v62 = vadd.f32 %v2459_v56, %v531_v33 }
 0xbcb   : > { %1927 = vmatmul.msk.f32.vlgmr.msra.gmra.mxu2 %vm1654_vm3, %v1652_v55 }
 0xbcc   : > { %v1814_v55 = vrot.slane %v609_v62, 4 }
 0xc4e   : > { %v1675_v63 = vpop.f32.mrf.mxu2 }
 0xc4f   : > { %v1676_v30 = vadd.f32 %v1675_v63, %v1653_v11 }
 0xc51   : > { %v1678_v0 = vmax.f32 %v1676_v30, 0.0 }
 0xc53   : > { %1928 = vmatpush.msk.msrb.mxu2 %vm578_vm0, %v1678_v0  ;;  %v1815_v0 = vsel %vm578_vm0, %v1308_v24, %v1814_v55 }
 0xc54   : > { %1929 = vmatmul.msk.f32.vlgmr.msrb.gmra.mxu2 %vm565_vm1, %v1679_v36 }
 0xcd7   : > { %v1704_v4 = vpop.f32.mrf.mxu2 }
 0xcd8   : > { %v1705_v50 = vadd.f32 %v1704_v4, %v1680_v2 }
 0xcda   : > { %v1930_v5 = vmul.f32 -1.442695, %v1705_v50 }
 0xcdc   : > { %2136 = vpow2.f32 %v1930_v5 }
 0xce2   : > { %v2137_v61 = vpop.eup %2136 }
 0xce3   : > { %v1710_v6 = vadd.f32 1.0, %v2137_v61 }
 0xce5   : > { %2138 = vrcp.f32 %v1710_v6  ;;  %v1722_v10 = vand.u32 2147483648, %v1710_v6  ;;  %v1720_v15 = vand.u32 2147483647, %v1710_v6  ;;  %vm1716_vm1 = vweird.f32 %v1710_v6 }
 0xce7   : > { %v1723_v19 = vor.u32 1.1754944e-38, %v1722_v10  ;;  %vm1721_vm14 = vcmp.eq.f32.partialorder %v1720_v15, 8.507059e+37 }
 0xceb   : > { %v2139_v7 = vpop.eup %2138 }
 0xcec   : > { %v1712_v8 = vmul.f32 %v2139_v7, %v1710_v6  ;;  %vm1717_vm13 = vweird.f32 %v2139_v7 }
 0xced   : > { %vm1718_vm11 = vmor %vm1716_vm1, %vm1717_vm13 }
 0xcee   : > { %v1713_v9 = vsub.f32 1.0, %v1712_v8 }
 0xcf0   : > { %v1714_v12 = vmul.f32 %v2139_v7, %v1713_v9 }
 0xcf2   : > { %v1715_v16 = vadd.f32 %v2139_v7, %v1714_v12 }
 0xcf4   : > { %v1719_v20 = vsel %vm1718_vm11, %v2139_v7, %v1715_v16 }
 0xcf5   : > { %v1724_v21 = vsel %vm1721_vm14, %v1723_v19, %v1719_v20 }
 0xcf6   : > { %v1726_v25 = vadd.f32 1.0, %v1724_v21 }
 0xcf8   : > { %1729 = vperm.xlu1 %2079, %v1726_v25  }
 0xd6a   : > { %v1730_v26 = vpop.permute.xlu1 %1729 }
 0xd6b   : > { %v1732_v27 = vmul.f32 %v1730_v26, %v1648_v58 }
 0xd6d   : > { %1734 = vrot.lane.b32.xlu1 %v1732_v27, %s2747_s22 }
 0xddf   : > { %v1735_v28 = vpop.permute.xlu1 %1734 }
 0xde0   : > { %v1737_v29 = vsel %vm846_vm7, 0.0, %v1735_v28  ;;  %v1738_v22 = vsel %vm846_vm7, %v1735_v28, 0.0  ;;  %1931 = vmatpush.msk.msra.mxu0 %vm846_vm7, %v1735_v28 }
 0xde1   : > { %v2106_v59 = vpack.i.bf16 %v1738_v22, %v1737_v29 }
 0xde3   : > { %2107 = vrot.lane.b32.xlu2 %v2106_v59, %s2169_s21  ;;  %2092 = vrot.lane.b32.xlu0 %v2106_v59, %s2746_s16  ;;  %s1893_s16 = sshll.u32 %s2754_s19, 3 }
 0xde4   : > { %2082 = vrot.lane.b32.xlu1 %v2106_v59, %s2748_s17  ;;  %s503_s23 = scalar_lea.vmem %s2735_s15, %s1893_s16 }
 0xdeb   : > { %2102 = vrot.lane.b32.xlu0 %v2106_v59, %s2173_s25 }
 0xdec   : > { %2087 = vrot.lane.b32.xlu1 %v2106_v59, %s2751_s29 }
 0xdf3   : > { %1787 = vperm.xlu0 %2080, %v1784_v32  }
 0xdf4   : > { %2097 = vrot.lane.b32.xlu1 %v2106_v59, %s2752_s24 }
 0xdfc   : > { %2112 = vrot.lane.b32.xlu1 %v2106_v59, %s2747_s22 }
 0xe3d   : > { %v2108_v38 = vpop.permute.xlu2 %2107 }
 0xe3e   : > { %v2110_v17 = vunpack.i.h.bf16 %v2108_v38  ;;  %v2109_v44 = vunpack.i.l.bf16 %v2108_v38 }
 0xe40   : > { %v1769_v46 = vsel %vm844_vm6, %v2109_v44, %v2110_v17 }
 0xe55   : > { %v2093_v35 = vpop.permute.xlu0 %2092 }
 0xe56   : > { %v2083_v34 = vpop.permute.xlu1 %2082  ;;  %v2095_v48 = vunpack.i.h.bf16 %v2093_v35  ;;  %v2094_v49 = vunpack.i.l.bf16 %v2093_v35 }
 0xe57   : > { %v2085_v3 = vunpack.i.h.bf16 %v2083_v34  ;;  %v2084_v54 = vunpack.i.l.bf16 %v2083_v34 }
 0xe58   : > { %v1757_v13 = vsel %vm848_vm8, %v2094_v49, %v2095_v48 }
 0xe59   : > { %v1745_v58 = vsel %vm852_vm10, %v2084_v54, %v2085_v3 }
 0xe5d   : > { %v2103_v37 = vpop.permute.xlu0 %2102 }
 0xe5e   : > { %v2088_v31 = vpop.permute.xlu1 %2087  ;;  %v2105_v40 = vunpack.i.h.bf16 %v2103_v37  ;;  %v2104_v41 = vunpack.i.l.bf16 %v2103_v37 }
 0xe5f   : > { %v2090_v52 = vunpack.i.h.bf16 %v2088_v31  ;;  %v2089_v53 = vunpack.i.l.bf16 %v2088_v31 }
 0xe60   : > { %v1775_v18 = vsel %vm842_vm5, %v2104_v41, %v2105_v40 }
 0xe61   : > { %v1751_v57 = vsel %vm850_vm9, %v2089_v53, %v2090_v52 }
 0xe65   : > { %v1788_v11 = vpop.permute.xlu0 %1787 }
 0xe66   : > { %v2098_v39 = vpop.permute.xlu1 %2097 }
 0xe67   : > { %v2100_v42 = vunpack.i.h.bf16 %v2098_v39  ;;  %v2099_v43 = vunpack.i.l.bf16 %v2098_v39 }
 0xe69   : > { %v1781_v45 = vsel %vm730_vm4, %v2099_v43, %v2100_v42  ;;  %vm1932_vm4 = vmneg %vm846_vm7 }
 0xe6a   : > { %1801 = vmatpush.msra.mxu0 %v1781_v45 }
 0xe6c   : > { %1802 = vmatpush.msra.mxu0 %v1775_v18 }
 0xe6e   : > { %v2113_v47 = vpop.permute.xlu1 %2112  ;;  %1803 = vmatpush.msra.mxu0 %v1769_v46 }
 0xe6f   : > { %v2115_v1 = vunpack.i.h.bf16 %v2113_v47  ;;  %v2114_v51 = vunpack.i.l.bf16 %v2113_v47 }
 0xe71   : > { %v1763_v14 = vsel %vm846_vm7, %v2114_v51, %v2115_v1 }
 0xe72   : > { %1804 = vmatpush.msra.mxu0 %v1763_v14 }
 0xe74   : > { %1805 = vmatpush.msra.mxu0 %v1757_v13 }
 0xe76   : > { %1806 = vmatpush.msra.mxu0 %v1751_v57 }
 0xe78   : > { %1807 = vmatpush.msra.mxu0 %v1745_v58 }
 0xe7a   : > { %1933 = vmatpush.msk.msra.mxu0 %vm1932_vm4, %v1735_v28 }
 0xe7b   : > { %1934 = vmatmul.msk.f32.vlgmr.msra.gmra.mxu0 %vm1563_vm12, %v1783_v60 }
 0xef8   : > { %v1810_v63 = vpop.f32.mrf.mxu0 }
 0xef9   : > { %v1811_v30 = vadd.f32 %v1810_v63, %v1788_v11 }
 0xefb   : > { %v1817_v36 = vadd.f32 %v1815_v0, %v1811_v30 }
 0xefd   : > { %v1818_v2 = vmax.f32 %v1817_v36, 0.0 }
 0xeff   : > { %1819 = vst [vmem:[%s503_s23] sm:$0xff] %v1818_v2 }
 0xf00 PF: > { %s26_s18 = sadd.s32 1, %s2165_s18  }
 0xf01   : > { %p23_p7 = scmp.ge.s32.totalorder %s26_s18, 4  }
 0xf03   :  { %25 = sbr.rel (!%p23_p7) target bundleno = 1 (0x1), region = 115 }
 0xf08   :  { %1839 = vsyncpa [#allocation3], 1 }
 0xf09   :  { %1841 = vsyncpa [#allocation3 + $0x1], 1 }

</bundles_post_ra>
